<compile_context>
chip_gen: v6e
topology: v6e:2x2x1
jax: 0.10.0
libtpu: 0.0.40
codegen_flags: <defaults>
</compile_context>

<pallas_src>
import jax
import jax.numpy as jnp
import numpy as np
from jax import lax
from jax.experimental import pallas as pl
from jax.experimental.pallas import tpu as pltpu

# ---- problem sizes (small, consistent with the module) ----------------------
N, C, H, W = 2, 4, 16, 16
DEPTH = 8
NUM_CLASSES = 3
MULT = 1
DILATIONS = (6 * MULT, 12 * MULT, 18 * MULT)
EPS = 3e-4                      # BatchNorm2d(depth, momentum) -> eps = momentum
HW = H * W
P = N * HW                      # flattened pixel count (lane axis), 512

# static tap offset table: branch b (dilation index), tap t -> (dy, dx)
# tap order matches weight tap order (ky major, kx minor -> t = ky*3 + kx)
OFFSETS = tuple(
    tuple((dy, dx) for dy in (-d, 0, d) for dx in (-d, 0, d))
    for d in DILATIONS
)


def _enumerate_groups():
    """Non-center taps that touch the image at all (dead taps statically dropped)."""
    groups = []
    for b in range(3):
        for t, (dy, dx) in enumerate(OFFSETS[b]):
            if dy == 0 and dx == 0:
                continue                      # center taps share the unshifted group
            if abs(dy) >= H or abs(dx) >= W:
                continue                      # fully outside (dilation 18 on 16x16)
            groups.append((b, t, dy, dx))
    return tuple(groups)


GROUPS = _enumerate_groups()     # 16 live shifted taps (8 for dil 6, 8 for dil 12)
NG = len(GROUPS)
NSLOTS = 1 + NG                  # + the shared unshifted group
if NSLOTS % 2:
    NSLOTS += 1                  # pad to an even number of 4-row groups (8-row pairs)
NPAIRS = NSLOTS // 2             # 9
KSTACK = C * NSLOTS              # 72: contraction depth of the fused matmul


def _make_mask_slab():
    """(KSTACK, P) f32: rows 4s:4s+4 = validity mask of stack group s (1.0 for
    the unshifted group, 0.0 for the padding slot).  One dense aligned DMA."""
    hh = np.arange(HW) // W
    ww = np.arange(HW) % W
    slab = np.zeros((KSTACK, P), np.float32)
    slab[0:C, :] = 1.0                                    # unshifted group
    for gi, (_b, _t, dy, dx) in enumerate(GROUPS):
        valid = ((hh + dy >= 0) & (hh + dy < H) &
                 (ww + dx >= 0) & (ww + dx < W)).astype(np.float32)
        slab[C * (gi + 1):C * (gi + 2), :] = np.tile(valid, N)[None, :]
    return slab


_MASK_SLAB_NP = _make_mask_slab()

# ---- dense parameter-slab layout (one aligned (40,128) DMA) ------------------
PSLAB_ROWS, PSLAB_COLS = 40, 128
COL_G14 = KSTACK                     # 72
COL_B14 = COL_G14 + 1                # 73
COL_W5 = COL_B14 + 1                 # 74..78
COL_G5 = COL_W5 + C                  # 78
COL_B5 = COL_G5 + 1                  # 79
COL_WC2A = COL_B5 + 1                # 80..112
COL_WC2B = COL_WC2A + 4 * DEPTH      # 112..120
COL_GH = COL_WC2B + DEPTH            # 120
COL_BH = COL_GH + 1                  # 121
ROW_WC3 = 4 * DEPTH                  # 32
assert COL_BH < PSLAB_COLS and ROW_WC3 + NUM_CLASSES <= PSLAB_ROWS


# ----------------------------- Pallas kernel ---------------------------------
def aspp_kernel(xdup_ref, mask_ref, ps_ref, out_ref):
    # (N, 2C, HW) -> (2C, P): lane-axis concat of 128-aligned per-image slabs.
    xpair = jnp.concatenate([xdup_ref[n, :, :] for n in range(N)], axis=1)  # (2C, P)

    # ---- masked + shifted activation stack xs (KSTACK, P), 8 rows at a time --
    # Each 8-row block holds two 4-channel groups (top/bottom halves picked from
    # two differently-rolled copies of x), so every sublane op stays aligned.
    rowsel = lax.broadcasted_iota(jnp.int32, (2 * C, 1), 0) < C   # top-half selector
    blocks = []
    for j in range(NPAIRS):
        s_top, s_bot = 2 * j, 2 * j + 1
        if s_top == 0:
            top = xpair                                   # unshifted (1x1 + center taps)
        else:
            _, _, dy, dx = GROUPS[s_top - 1]
            top = pltpu.roll(xpair, shift=(-(dy * W + dx)) % P, axis=1)
        if s_bot < 1 + NG:
            _, _, dy, dx = GROUPS[s_bot - 1]
            bot = pltpu.roll(xpair, shift=(-(dy * W + dx)) % P, axis=1)
            sel = jnp.where(rowsel, top, bot)
        else:
            sel = top                                     # padding slot: mask rows are 0
        # mask zeroes out-of-image taps AND any cross-image pull from the roll
        blocks.append(sel * mask_ref[8 * j:8 * j + 8, :])
    xs = jnp.concatenate(blocks, axis=0)                  # (KSTACK, P), 8-row aligned

    # ---- ONE MXU matmul produces all four conv branches (pre-BN) ------------
    wb = ps_ref[0:4 * DEPTH, 0:KSTACK]                                    # (4D, KSTACK)
    z14 = jnp.dot(wb, xs, preferred_element_type=jnp.float32)             # (4D, P)

    # ---- fused BN (training batch stats, centered 2-pass) + ReLU, br. 1-4 ---
    g14 = ps_ref[0:4 * DEPTH, COL_G14:COL_G14 + 1]
    b14 = ps_ref[0:4 * DEPTH, COL_B14:COL_B14 + 1]
    mu = jnp.mean(z14, axis=1, keepdims=True)
    dz = z14 - mu
    var = jnp.mean(dz * dz, axis=1, keepdims=True)
    y14 = jnp.maximum(dz * lax.rsqrt(var + EPS) * g14 + b14, 0.0)         # (4D, P)

    # ---- branch 5: per-image global average pool -> 1x1 -> BN -> ReLU -------
    xm = jnp.concatenate(
        [jnp.mean(xpair[0:C, n * HW:(n + 1) * HW], axis=1, keepdims=True)
         for n in range(N)], axis=1)                                       # (C, N)
    w5 = ps_ref[0:DEPTH, COL_W5:COL_W5 + C]                                # (D, C)
    z5 = jnp.dot(w5, xm, preferred_element_type=jnp.float32)               # (D, N)
    g5 = ps_ref[0:DEPTH, COL_G5:COL_G5 + 1]
    b5 = ps_ref[0:DEPTH, COL_B5:COL_B5 + 1]
    mu5 = jnp.mean(z5, axis=1, keepdims=True)
    d5 = z5 - mu5
    var5 = jnp.mean(d5 * d5, axis=1, keepdims=True)
    y5 = jnp.maximum(d5 * lax.rsqrt(var5 + EPS) * g5 + b5, 0.0)            # (D, N)

    # ---- concat + conv2, algebraically split (no 40-row concat / y5 bcast) ---
    wc2a = ps_ref[0:DEPTH, COL_WC2A:COL_WC2A + 4 * DEPTH]                  # (D, 4D)
    wc2b = ps_ref[0:DEPTH, COL_WC2B:COL_WC2B + DEPTH]                      # (D, D)
    v5 = jnp.dot(wc2b, y5, preferred_element_type=jnp.float32)             # (D, N)
    v5b = jnp.concatenate(
        [jnp.broadcast_to(v5[:, n:n + 1], (DEPTH, HW)) for n in range(N)],
        axis=1)                                                            # (D, P)
    hz = jnp.dot(wc2a, y14, preferred_element_type=jnp.float32) + v5b      # (D, P)

    gh = ps_ref[0:DEPTH, COL_GH:COL_GH + 1]
    bh = ps_ref[0:DEPTH, COL_BH:COL_BH + 1]
    muh = jnp.mean(hz, axis=1, keepdims=True)
    dh = hz - muh
    varh = jnp.mean(dh * dh, axis=1, keepdims=True)
    hrelu = jnp.maximum(dh * lax.rsqrt(varh + EPS) * gh + bh, 0.0)         # (D, P)

    # ---- final 1x1 conv with bias --------------------------------------------
    wc3 = ps_ref[ROW_WC3:ROW_WC3 + NUM_CLASSES, 0:DEPTH]                   # (NC, D)
    b3 = ps_ref[ROW_WC3:ROW_WC3 + NUM_CLASSES, DEPTH:DEPTH + 1]            # (NC, 1)
    out = jnp.dot(wc3, hrelu, preferred_element_type=jnp.float32) + b3     # (NC, P)

    # write as (N, NUM_CLASSES, HW) so the wrapper needs only a free reshape
    for n in range(N):
        out_ref[n, :, :] = out[:, n * HW:(n + 1) * HW]


# ------------------------------- wrapper --------------------------------------
def _full_spec(a):
    nd = a.ndim
    return pl.BlockSpec(a.shape, lambda i, _nd=nd: (0,) * _nd)


def aspp_forward(x_nchw, kp):
    # NCHW -> (N, C, HW) is a free reshape; channel duplication gives aligned
    # 8-row slabs for the in-kernel roll/select stacking.
    x3 = x_nchw.reshape(N, C, HW).astype(jnp.float32)
    xdup = jnp.concatenate([x3, x3], axis=1)              # (N, 2C, HW), tiny
    args = (xdup, kp['mask_slab'], kp['param_slab'])
    out3 = pl.pallas_call(
        aspp_kernel,
        grid=(1,),
        in_specs=[_full_spec(a) for a in args],
        out_specs=pl.BlockSpec((N, NUM_CLASSES, HW), lambda i: (0, 0, 0)),
        out_shape=jax.ShapeDtypeStruct((N, NUM_CLASSES, HW), jnp.float32),
        compiler_params=pltpu.CompilerParams(
            dimension_semantics=("arbitrary",)),           # single TC; no core split
    )(*args)
    # (N, NUM_CLASSES, H*W) -> NCHW: pure reshape, free.
    return out3.reshape(N, NUM_CLASSES, H, W)


# ----------------------- parameters (deterministic) ---------------------------
def init_params(key):
    ks = jax.random.split(key, 10)

    def rnd(k, shape, scale=0.2):
        return jax.random.normal(k, shape, jnp.float32) * scale

    full = {
        'w1': rnd(ks[0], (DEPTH, C, 1, 1)),
        'w2': rnd(ks[1], (DEPTH, C, 3, 3)),
        'w3': rnd(ks[2], (DEPTH, C, 3, 3)),
        'w4': rnd(ks[3], (DEPTH, C, 3, 3)),
        'w5': rnd(ks[4], (DEPTH, C, 1, 1)),
        'wc2': rnd(ks[5], (DEPTH, 5 * DEPTH, 1, 1)),
        'wc3': rnd(ks[6], (NUM_CLASSES, DEPTH, 1, 1)),
        'b3': rnd(ks[7], (NUM_CLASSES,)),
        'gamma': 1.0 + rnd(ks[8], (6, DEPTH), 0.1),
        'beta': rnd(ks[9], (6, DEPTH), 0.1),
    }

    wdil = (np.asarray(full['w2']), np.asarray(full['w3']), np.asarray(full['w4']))

    def tap(b, t):                       # weight of tap t = ky*3 + kx -> (D, C)
        return wdil[b][:, :, t // 3, t % 3]

    # block weight for the single fused matmul over the stacked activations
    wb = np.zeros((4 * DEPTH, KSTACK), np.float32)
    wb[0:DEPTH, 0:C] = np.asarray(full['w1'][:, :, 0, 0])        # 1x1 branch
    for b in range(3):                                           # center taps share group 0
        wb[(b + 1) * DEPTH:(b + 2) * DEPTH, 0:C] = tap(b, 4)
    for gi, (b, t, _dy, _dx) in enumerate(GROUPS):               # live shifted taps
        c0 = C * (gi + 1)
        wb[(b + 1) * DEPTH:(b + 2) * DEPTH, c0:c0 + C] = tap(b, t)

    # dense parameter slab: one aligned (40, 128) DMA carries every weight / BN param
    ps = np.zeros((PSLAB_ROWS, PSLAB_COLS), np.float32)
    ps[0:4 * DEPTH, 0:KSTACK] = wb
    ps[0:4 * DEPTH, COL_G14] = np.asarray(full['gamma'][0:4]).reshape(-1)
    ps[0:4 * DEPTH, COL_B14] = np.asarray(full['beta'][0:4]).reshape(-1)
    ps[0:DEPTH, COL_W5:COL_W5 + C] = np.asarray(full['w5'][:, :, 0, 0])
    ps[0:DEPTH, COL_G5] = np.asarray(full['gamma'][4])
    ps[0:DEPTH, COL_B5] = np.asarray(full['beta'][4])
    ps[0:DEPTH, COL_WC2A:COL_WC2A + 4 * DEPTH] = np.asarray(full['wc2'][:, 0:4 * DEPTH, 0, 0])
    ps[0:DEPTH, COL_WC2B:COL_WC2B + DEPTH] = np.asarray(full['wc2'][:, 4 * DEPTH:, 0, 0])
    ps[0:DEPTH, COL_GH] = np.asarray(full['gamma'][5])
    ps[0:DEPTH, COL_BH] = np.asarray(full['beta'][5])
    ps[ROW_WC3:ROW_WC3 + NUM_CLASSES, 0:DEPTH] = np.asarray(full['wc3'][:, :, 0, 0])
    ps[ROW_WC3:ROW_WC3 + NUM_CLASSES, DEPTH] = np.asarray(full['b3'])

    kernel_params = {
        'mask_slab': jnp.asarray(_MASK_SLAB_NP),       # (KSTACK, P)
        'param_slab': jnp.asarray(ps),                 # (40, 128)
    }
    return full, kernel_params


# ----------------------- pure-JAX reference (for checking) --------------------
def reference_forward(x, full):
    dn = ('NCHW', 'OIHW', 'NCHW')

    def conv(inp, w, dilation=1, padding=0):
        return lax.conv_general_dilated(
            inp, w, window_strides=(1, 1),
            padding=[(padding, padding), (padding, padding)],
            rhs_dilation=(dilation, dilation), dimension_numbers=dn)

    def bn_relu(y, g, b):
        mu = jnp.mean(y, axis=(0, 2, 3), keepdims=True)
        var = jnp.mean((y - mu) ** 2, axis=(0, 2, 3), keepdims=True)
        yn = (y - mu) * lax.rsqrt(var + EPS) * g.reshape(1, -1, 1, 1) \
            + b.reshape(1, -1, 1, 1)
        return jnp.maximum(yn, 0.0)

    x1 = bn_relu(conv(x, full['w1']), full['gamma'][0], full['beta'][0])
    x2 = bn_relu(conv(x, full['w2'], DILATIONS[0], DILATIONS[0]),
                 full['gamma'][1], full['beta'][1])
    x3 = bn_relu(conv(x, full['w3'], DILATIONS[1], DILATIONS[1]),
                 full['gamma'][2], full['beta'][2])
    x4 = bn_relu(conv(x, full['w4'], DILATIONS[2], DILATIONS[2]),
                 full['gamma'][3], full['beta'][3])
    xp = jnp.mean(x, axis=(2, 3), keepdims=True)
    x5 = bn_relu(conv(xp, full['w5']), full['gamma'][4], full['beta'][4])
    # bilinear upsample from 1x1 with align_corners=True == broadcast
    x5 = jnp.broadcast_to(x5, (N, DEPTH, H, W))
    cat = jnp.concatenate([x1, x2, x3, x4, x5], axis=1)
    h = bn_relu(conv(cat, full['wc2']), full['gamma'][5], full['beta'][5])
    return conv(h, full['wc3']) + full['b3'].reshape(1, -1, 1, 1)


# ----------------------------------- main --------------------------------------
if __name__ == "__main__":
    key = jax.random.PRNGKey(0)
    kx, kp = jax.random.split(key)
    x = jax.random.normal(kx, (N, C, H, W), jnp.float32)

    full_params, kernel_params = init_params(kp)

    out = jax.block_until_ready(aspp_forward(x, kernel_params))
    ref = jax.block_until_ready(reference_forward(x, full_params))

    assert out.shape == (N, NUM_CLASSES, H, W)
    if not np.allclose(np.asarray(out), np.asarray(ref), atol=1e-3, rtol=1e-3):
        raise AssertionError("Pallas ASPP output does not match JAX reference")

    print("KERNEL_OK")
</pallas_src>

<mosaic_0001>
module attributes {stable_mosaic.version = 11 : i64} {
  func.func @aspp_kernel(%arg0: i32, %arg1: memref<2x8x256xf32, #tpu.memory_space<vmem>>, %arg2: memref<72x512xf32, #tpu.memory_space<vmem>>, %arg3: memref<40x128xf32, #tpu.memory_space<vmem>>, %arg4: memref<2x3x256xf32, #tpu.memory_space<vmem>>) attributes {dimension_semantics = [#tpu.dimension_semantics<arbitrary>], iteration_bounds = array<i64: 1>, scalar_prefetch = 0 : i64, scratch_operands = 0 : i64, tpu.core_type = #tpu.core_type<tc>, window_params = [{pipeline_mode = #tpu.pipeline_mode<synchronous>, transform_indices = @transform_0, window_bounds = array<i64: 2, 8, 256>}, {pipeline_mode = #tpu.pipeline_mode<synchronous>, transform_indices = @transform_1, window_bounds = array<i64: 72, 512>}, {pipeline_mode = #tpu.pipeline_mode<synchronous>, transform_indices = @transform_2, window_bounds = array<i64: 40, 128>}, {pipeline_mode = #tpu.pipeline_mode<synchronous>, transform_indices = @transform_3, window_bounds = array<i64: 2, 3, 256>}]} {
    %c0 = arith.constant 0 : index
    %c0_0 = arith.constant 0 : index
    %c0_1 = arith.constant 0 : index
    %0 = vector.load %arg1[%c0, %c0_0, %c0_1] : memref<2x8x256xf32, #tpu.memory_space<vmem>>, vector<1x8x256xf32>
    %1 = vector.shape_cast %0 : vector<1x8x256xf32> to vector<8x256xf32>
    %c1 = arith.constant 1 : index
    %c0_2 = arith.constant 0 : index
    %c0_3 = arith.constant 0 : index
    %2 = vector.load %arg1[%c1, %c0_2, %c0_3] : memref<2x8x256xf32, #tpu.memory_space<vmem>>, vector<1x8x256xf32>
    %3 = vector.shape_cast %2 : vector<1x8x256xf32> to vector<8x256xf32>
    %4 = tpu.concatenate %1, %3 in 1 : vector<8x256xf32>, vector<8x256xf32> -> vector<8x512xf32>
    %5 = tpu.iota {dimensions = array<i32: 0>} : vector<8x1xi32>
    %c4_i32 = arith.constant 4 : i32
    %6 = vector.broadcast %c4_i32 : i32 to vector<8x1xi32>
    %7 = arith.cmpi slt, %5, %6 : vector<8x1xi32>
    %c102_i32 = arith.constant 102 : i32
    %8 = tpu.dynamic_rotate %4 by %c102_i32 dim 1 : vector<8x512xf32>, i32 -> vector<8x512xf32>
    %9 = vector.shape_cast %7 : vector<8x1xi1> to vector<8x1xi1>
    %10 = vector.broadcast %9 : vector<8x1xi1> to vector<8x512xi1>
    %11 = arith.select %10, %4, %8 : vector<8x512xi1>, vector<8x512xf32>
    %c0_4 = arith.constant 0 : index
    %c0_5 = arith.constant 0 : index
    %12 = vector.load %arg2[%c0_4, %c0_5] : memref<72x512xf32, #tpu.memory_space<vmem>>, vector<8x512xf32>
    %13 = arith.mulf %11, %12 : vector<8x512xf32>
    %c96_i32 = arith.constant 96 : i32
    %14 = tpu.dynamic_rotate %4 by %c96_i32 dim 1 : vector<8x512xf32>, i32 -> vector<8x512xf32>
    %c90_i32 = arith.constant 90 : i32
    %15 = tpu.dynamic_rotate %4 by %c90_i32 dim 1 : vector<8x512xf32>, i32 -> vector<8x512xf32>
    %16 = vector.shape_cast %7 : vector<8x1xi1> to vector<8x1xi1>
    %17 = vector.broadcast %16 : vector<8x1xi1> to vector<8x512xi1>
    %18 = arith.select %17, %14, %15 : vector<8x512xi1>, vector<8x512xf32>
    %c8 = arith.constant 8 : index
    %c0_6 = arith.constant 0 : index
    %19 = vector.load %arg2[%c8, %c0_6] : memref<72x512xf32, #tpu.memory_space<vmem>>, vector<8x512xf32>
    %20 = arith.mulf %18, %19 : vector<8x512xf32>
    %c6_i32 = arith.constant 6 : i32
    %21 = tpu.dynamic_rotate %4 by %c6_i32 dim 1 : vector<8x512xf32>, i32 -> vector<8x512xf32>
    %c506_i32 = arith.constant 506 : i32
    %22 = tpu.dynamic_rotate %4 by %c506_i32 dim 1 : vector<8x512xf32>, i32 -> vector<8x512xf32>
    %23 = vector.shape_cast %7 : vector<8x1xi1> to vector<8x1xi1>
    %24 = vector.broadcast %23 : vector<8x1xi1> to vector<8x512xi1>
    %25 = arith.select %24, %21, %22 : vector<8x512xi1>, vector<8x512xf32>
    %c16 = arith.constant 16 : index
    %c0_7 = arith.constant 0 : index
    %26 = vector.load %arg2[%c16, %c0_7] : memref<72x512xf32, #tpu.memory_space<vmem>>, vector<8x512xf32>
    %27 = arith.mulf %25, %26 : vector<8x512xf32>
    %c422_i32 = arith.constant 422 : i32
    %28 = tpu.dynamic_rotate %4 by %c422_i32 dim 1 : vector<8x512xf32>, i32 -> vector<8x512xf32>
    %c416_i32 = arith.constant 416 : i32
    %29 = tpu.dynamic_rotate %4 by %c416_i32 dim 1 : vector<8x512xf32>, i32 -> vector<8x512xf32>
    %30 = vector.shape_cast %7 : vector<8x1xi1> to vector<8x1xi1>
    %31 = vector.broadcast %30 : vector<8x1xi1> to vector<8x512xi1>
    %32 = arith.select %31, %28, %29 : vector<8x512xi1>, vector<8x512xf32>
    %c24 = arith.constant 24 : index
    %c0_8 = arith.constant 0 : index
    %33 = vector.load %arg2[%c24, %c0_8] : memref<72x512xf32, #tpu.memory_space<vmem>>, vector<8x512xf32>
    %34 = arith.mulf %32, %33 : vector<8x512xf32>
    %c410_i32 = arith.constant 410 : i32
    %35 = tpu.dynamic_rotate %4 by %c410_i32 dim 1 : vector<8x512xf32>, i32 -> vector<8x512xf32>
    %c204_i32 = arith.constant 204 : i32
    %36 = tpu.dynamic_rotate %4 by %c204_i32 dim 1 : vector<8x512xf32>, i32 -> vector<8x512xf32>
    %37 = vector.shape_cast %7 : vector<8x1xi1> to vector<8x1xi1>
    %38 = vector.broadcast %37 : vector<8x1xi1> to vector<8x512xi1>
    %39 = arith.select %38, %35, %36 : vector<8x512xi1>, vector<8x512xf32>
    %c32 = arith.constant 32 : index
    %c0_9 = arith.constant 0 : index
    %40 = vector.load %arg2[%c32, %c0_9] : memref<72x512xf32, #tpu.memory_space<vmem>>, vector<8x512xf32>
    %41 = arith.mulf %39, %40 : vector<8x512xf32>
    %c192_i32 = arith.constant 192 : i32
    %42 = tpu.dynamic_rotate %4 by %c192_i32 dim 1 : vector<8x512xf32>, i32 -> vector<8x512xf32>
    %c180_i32 = arith.constant 180 : i32
    %43 = tpu.dynamic_rotate %4 by %c180_i32 dim 1 : vector<8x512xf32>, i32 -> vector<8x512xf32>
    %44 = vector.shape_cast %7 : vector<8x1xi1> to vector<8x1xi1>
    %45 = vector.broadcast %44 : vector<8x1xi1> to vector<8x512xi1>
    %46 = arith.select %45, %42, %43 : vector<8x512xi1>, vector<8x512xf32>
    %c40 = arith.constant 40 : index
    %c0_10 = arith.constant 0 : index
    %47 = vector.load %arg2[%c40, %c0_10] : memref<72x512xf32, #tpu.memory_space<vmem>>, vector<8x512xf32>
    %48 = arith.mulf %46, %47 : vector<8x512xf32>
    %c12_i32 = arith.constant 12 : i32
    %49 = tpu.dynamic_rotate %4 by %c12_i32 dim 1 : vector<8x512xf32>, i32 -> vector<8x512xf32>
    %c500_i32 = arith.constant 500 : i32
    %50 = tpu.dynamic_rotate %4 by %c500_i32 dim 1 : vector<8x512xf32>, i32 -> vector<8x512xf32>
    %51 = vector.shape_cast %7 : vector<8x1xi1> to vector<8x1xi1>
    %52 = vector.broadcast %51 : vector<8x1xi1> to vector<8x512xi1>
    %53 = arith.select %52, %49, %50 : vector<8x512xi1>, vector<8x512xf32>
    %c48 = arith.constant 48 : index
    %c0_11 = arith.constant 0 : index
    %54 = vector.load %arg2[%c48, %c0_11] : memref<72x512xf32, #tpu.memory_space<vmem>>, vector<8x512xf32>
    %55 = arith.mulf %53, %54 : vector<8x512xf32>
    %c332_i32 = arith.constant 332 : i32
    %56 = tpu.dynamic_rotate %4 by %c332_i32 dim 1 : vector<8x512xf32>, i32 -> vector<8x512xf32>
    %c320_i32 = arith.constant 320 : i32
    %57 = tpu.dynamic_rotate %4 by %c320_i32 dim 1 : vector<8x512xf32>, i32 -> vector<8x512xf32>
    %58 = vector.shape_cast %7 : vector<8x1xi1> to vector<8x1xi1>
    %59 = vector.broadcast %58 : vector<8x1xi1> to vector<8x512xi1>
    %60 = arith.select %59, %56, %57 : vector<8x512xi1>, vector<8x512xf32>
    %c56 = arith.constant 56 : index
    %c0_12 = arith.constant 0 : index
    %61 = vector.load %arg2[%c56, %c0_12] : memref<72x512xf32, #tpu.memory_space<vmem>>, vector<8x512xf32>
    %62 = arith.mulf %60, %61 : vector<8x512xf32>
    %c308_i32 = arith.constant 308 : i32
    %63 = tpu.dynamic_rotate %4 by %c308_i32 dim 1 : vector<8x512xf32>, i32 -> vector<8x512xf32>
    %c64 = arith.constant 64 : index
    %c0_13 = arith.constant 0 : index
    %64 = vector.load %arg2[%c64, %c0_13] : memref<72x512xf32, #tpu.memory_space<vmem>>, vector<8x512xf32>
    %65 = arith.mulf %63, %64 : vector<8x512xf32>
    %66 = tpu.concatenate %13, %20, %27, %34, %41, %48, %55, %62, %65 in 0 : vector<8x512xf32>, vector<8x512xf32>, vector<8x512xf32>, vector<8x512xf32>, vector<8x512xf32>, vector<8x512xf32>, vector<8x512xf32>, vector<8x512xf32>, vector<8x512xf32> -> vector<72x512xf32>
    %c0_14 = arith.constant 0 : index
    %c0_15 = arith.constant 0 : index
    %67 = vector.load %arg3[%c0_14, %c0_15] : memref<40x128xf32, #tpu.memory_space<vmem>>, vector<32x72xf32>
    %cst = arith.constant dense<0.000000e+00> : vector<32x512xf32>
    %68 = tpu.matmul %67, %66, %cst {dimension_numbers = #tpu.dot_dimension_numbers<[1], [0], [0], [1], [0, 0, 1, 1], [], []>} : vector<32x72xf32>, vector<72x512xf32>, vector<32x512xf32> -> vector<32x512xf32>
    %c0_16 = arith.constant 0 : index
    %c72 = arith.constant 72 : index
    %69 = vector.load %arg3[%c0_16, %c72] : memref<40x128xf32, #tpu.memory_space<vmem>>, vector<32x1xf32>
    %c0_17 = arith.constant 0 : index
    %c73 = arith.constant 73 : index
    %70 = vector.load %arg3[%c0_17, %c73] : memref<40x128xf32, #tpu.memory_space<vmem>>, vector<32x1xf32>
    %cst_18 = arith.constant dense<0.000000e+00> : vector<32xf32>
    %71 = vector.multi_reduction <add>, %68, %cst_18 [1] : vector<32x512xf32> to vector<32xf32>
    %72 = vector.shape_cast %71 : vector<32xf32> to vector<32x1xf32>
    %cst_19 = arith.constant 5.120000e+02 : f32
    %73 = vector.broadcast %cst_19 : f32 to vector<32x1xf32>
    %74 = arith.divf %72, %73 : vector<32x1xf32>
    %75 = vector.broadcast %74 : vector<32x1xf32> to vector<32x512xf32>
    %76 = arith.subf %68, %75 : vector<32x512xf32>
    %77 = arith.mulf %76, %76 : vector<32x512xf32>
    %cst_20 = arith.constant dense<0.000000e+00> : vector<32xf32>
    %78 = vector.multi_reduction <add>, %77, %cst_20 [1] : vector<32x512xf32> to vector<32xf32>
    %79 = vector.shape_cast %78 : vector<32xf32> to vector<32x1xf32>
    %cst_21 = arith.constant 5.120000e+02 : f32
    %80 = vector.broadcast %cst_21 : f32 to vector<32x1xf32>
    %81 = arith.divf %79, %80 : vector<32x1xf32>
    %cst_22 = arith.constant 3.000000e-04 : f32
    %82 = vector.broadcast %cst_22 : f32 to vector<32x1xf32>
    %83 = arith.addf %81, %82 : vector<32x1xf32>
    %84 = math.rsqrt %83 : vector<32x1xf32>
    %85 = vector.broadcast %84 : vector<32x1xf32> to vector<32x512xf32>
    %86 = arith.mulf %76, %85 : vector<32x512xf32>
    %87 = vector.broadcast %69 : vector<32x1xf32> to vector<32x512xf32>
    %88 = arith.mulf %86, %87 : vector<32x512xf32>
    %89 = vector.broadcast %70 : vector<32x1xf32> to vector<32x512xf32>
    %90 = arith.addf %88, %89 : vector<32x512xf32>
    %cst_23 = arith.constant 0.000000e+00 : f32
    %91 = vector.broadcast %cst_23 : f32 to vector<32x512xf32>
    %92 = arith.maximumf %90, %91 : vector<32x512xf32>
    %93 = vector.extract_strided_slice %4 {offsets = [0, 0], sizes = [4, 256], strides = [1, 1]} : vector<8x512xf32> to vector<4x256xf32>
    %cst_24 = arith.constant dense<0.000000e+00> : vector<4xf32>
    %94 = vector.multi_reduction <add>, %93, %cst_24 [1] : vector<4x256xf32> to vector<4xf32>
    %95 = vector.shape_cast %94 : vector<4xf32> to vector<4x1xf32>
    %cst_25 = arith.constant 2.560000e+02 : f32
    %96 = vector.broadcast %cst_25 : f32 to vector<4x1xf32>
    %97 = arith.divf %95, %96 : vector<4x1xf32>
    %98 = vector.extract_strided_slice %4 {offsets = [0, 256], sizes = [4, 256], strides = [1, 1]} : vector<8x512xf32> to vector<4x256xf32>
    %cst_26 = arith.constant dense<0.000000e+00> : vector<4xf32>
    %99 = vector.multi_reduction <add>, %98, %cst_26 [1] : vector<4x256xf32> to vector<4xf32>
    %100 = vector.shape_cast %99 : vector<4xf32> to vector<4x1xf32>
    %cst_27 = arith.constant 2.560000e+02 : f32
    %101 = vector.broadcast %cst_27 : f32 to vector<4x1xf32>
    %102 = arith.divf %100, %101 : vector<4x1xf32>
    %103 = tpu.concatenate %97, %102 in 1 : vector<4x1xf32>, vector<4x1xf32> -> vector<4x2xf32>
    %c0_28 = arith.constant 0 : index
    %c74 = arith.constant 74 : index
    %104 = vector.load %arg3[%c0_28, %c74] : memref<40x128xf32, #tpu.memory_space<vmem>>, vector<8x4xf32>
    %cst_29 = arith.constant dense<0.000000e+00> : vector<8x2xf32>
    %105 = tpu.matmul %104, %103, %cst_29 {dimension_numbers = #tpu.dot_dimension_numbers<[1], [0], [0], [1], [0, 0, 1, 1], [], []>} : vector<8x4xf32>, vector<4x2xf32>, vector<8x2xf32> -> vector<8x2xf32>
    %c0_30 = arith.constant 0 : index
    %c78 = arith.constant 78 : index
    %106 = vector.load %arg3[%c0_30, %c78] : memref<40x128xf32, #tpu.memory_space<vmem>>, vector<8x1xf32>
    %c0_31 = arith.constant 0 : index
    %c79 = arith.constant 79 : index
    %107 = vector.load %arg3[%c0_31, %c79] : memref<40x128xf32, #tpu.memory_space<vmem>>, vector<8x1xf32>
    %cst_32 = arith.constant dense<0.000000e+00> : vector<8xf32>
    %108 = vector.multi_reduction <add>, %105, %cst_32 [1] : vector<8x2xf32> to vector<8xf32>
    %109 = vector.shape_cast %108 : vector<8xf32> to vector<8x1xf32>
    %cst_33 = arith.constant 2.000000e+00 : f32
    %110 = vector.broadcast %cst_33 : f32 to vector<8x1xf32>
    %111 = arith.divf %109, %110 : vector<8x1xf32>
    %112 = vector.broadcast %111 : vector<8x1xf32> to vector<8x2xf32>
    %113 = arith.subf %105, %112 : vector<8x2xf32>
    %114 = arith.mulf %113, %113 : vector<8x2xf32>
    %cst_34 = arith.constant dense<0.000000e+00> : vector<8xf32>
    %115 = vector.multi_reduction <add>, %114, %cst_34 [1] : vector<8x2xf32> to vector<8xf32>
    %116 = vector.shape_cast %115 : vector<8xf32> to vector<8x1xf32>
    %cst_35 = arith.constant 2.000000e+00 : f32
    %117 = vector.broadcast %cst_35 : f32 to vector<8x1xf32>
    %118 = arith.divf %116, %117 : vector<8x1xf32>
    %cst_36 = arith.constant 3.000000e-04 : f32
    %119 = vector.broadcast %cst_36 : f32 to vector<8x1xf32>
    %120 = arith.addf %118, %119 : vector<8x1xf32>
    %121 = math.rsqrt %120 : vector<8x1xf32>
    %122 = vector.broadcast %121 : vector<8x1xf32> to vector<8x2xf32>
    %123 = arith.mulf %113, %122 : vector<8x2xf32>
    %124 = vector.broadcast %106 : vector<8x1xf32> to vector<8x2xf32>
    %125 = arith.mulf %123, %124 : vector<8x2xf32>
    %126 = vector.broadcast %107 : vector<8x1xf32> to vector<8x2xf32>
    %127 = arith.addf %125, %126 : vector<8x2xf32>
    %cst_37 = arith.constant 0.000000e+00 : f32
    %128 = vector.broadcast %cst_37 : f32 to vector<8x2xf32>
    %129 = arith.maximumf %127, %128 : vector<8x2xf32>
    %c0_38 = arith.constant 0 : index
    %c80 = arith.constant 80 : index
    %130 = vector.load %arg3[%c0_38, %c80] : memref<40x128xf32, #tpu.memory_space<vmem>>, vector<8x32xf32>
    %c0_39 = arith.constant 0 : index
    %c112 = arith.constant 112 : index
    %131 = vector.load %arg3[%c0_39, %c112] : memref<40x128xf32, #tpu.memory_space<vmem>>, vector<8x8xf32>
    %cst_40 = arith.constant dense<0.000000e+00> : vector<8x2xf32>
    %132 = tpu.matmul %131, %129, %cst_40 {dimension_numbers = #tpu.dot_dimension_numbers<[1], [0], [0], [1], [0, 0, 1, 1], [], []>} : vector<8x8xf32>, vector<8x2xf32>, vector<8x2xf32> -> vector<8x2xf32>
    %133 = vector.extract_strided_slice %132 {offsets = [0, 0], sizes = [8, 1], strides = [1, 1]} : vector<8x2xf32> to vector<8x1xf32>
    %134 = vector.shape_cast %133 : vector<8x1xf32> to vector<8x1xf32>
    %135 = vector.broadcast %134 : vector<8x1xf32> to vector<8x256xf32>
    %136 = vector.extract_strided_slice %132 {offsets = [0, 1], sizes = [8, 1], strides = [1, 1]} : vector<8x2xf32> to vector<8x1xf32>
    %137 = vector.shape_cast %136 : vector<8x1xf32> to vector<8x1xf32>
    %138 = vector.broadcast %137 : vector<8x1xf32> to vector<8x256xf32>
    %139 = tpu.concatenate %135, %138 in 1 : vector<8x256xf32>, vector<8x256xf32> -> vector<8x512xf32>
    %cst_41 = arith.constant dense<0.000000e+00> : vector<8x512xf32>
    %140 = tpu.matmul %130, %92, %cst_41 {dimension_numbers = #tpu.dot_dimension_numbers<[1], [0], [0], [1], [0, 0, 1, 1], [], []>} : vector<8x32xf32>, vector<32x512xf32>, vector<8x512xf32> -> vector<8x512xf32>
    %141 = arith.addf %140, %139 : vector<8x512xf32>
    %c0_42 = arith.constant 0 : index
    %c120 = arith.constant 120 : index
    %142 = vector.load %arg3[%c0_42, %c120] : memref<40x128xf32, #tpu.memory_space<vmem>>, vector<8x1xf32>
    %c0_43 = arith.constant 0 : index
    %c121 = arith.constant 121 : index
    %143 = vector.load %arg3[%c0_43, %c121] : memref<40x128xf32, #tpu.memory_space<vmem>>, vector<8x1xf32>
    %cst_44 = arith.constant dense<0.000000e+00> : vector<8xf32>
    %144 = vector.multi_reduction <add>, %141, %cst_44 [1] : vector<8x512xf32> to vector<8xf32>
    %145 = vector.shape_cast %144 : vector<8xf32> to vector<8x1xf32>
    %cst_45 = arith.constant 5.120000e+02 : f32
    %146 = vector.broadcast %cst_45 : f32 to vector<8x1xf32>
    %147 = arith.divf %145, %146 : vector<8x1xf32>
    %148 = vector.broadcast %147 : vector<8x1xf32> to vector<8x512xf32>
    %149 = arith.subf %141, %148 : vector<8x512xf32>
    %150 = arith.mulf %149, %149 : vector<8x512xf32>
    %cst_46 = arith.constant dense<0.000000e+00> : vector<8xf32>
    %151 = vector.multi_reduction <add>, %150, %cst_46 [1] : vector<8x512xf32> to vector<8xf32>
    %152 = vector.shape_cast %151 : vector<8xf32> to vector<8x1xf32>
    %cst_47 = arith.constant 5.120000e+02 : f32
    %153 = vector.broadcast %cst_47 : f32 to vector<8x1xf32>
    %154 = arith.divf %152, %153 : vector<8x1xf32>
    %cst_48 = arith.constant 3.000000e-04 : f32
    %155 = vector.broadcast %cst_48 : f32 to vector<8x1xf32>
    %156 = arith.addf %154, %155 : vector<8x1xf32>
    %157 = math.rsqrt %156 : vector<8x1xf32>
    %158 = vector.broadcast %157 : vector<8x1xf32> to vector<8x512xf32>
    %159 = arith.mulf %149, %158 : vector<8x512xf32>
    %160 = vector.broadcast %142 : vector<8x1xf32> to vector<8x512xf32>
    %161 = arith.mulf %159, %160 : vector<8x512xf32>
    %162 = vector.broadcast %143 : vector<8x1xf32> to vector<8x512xf32>
    %163 = arith.addf %161, %162 : vector<8x512xf32>
    %cst_49 = arith.constant 0.000000e+00 : f32
    %164 = vector.broadcast %cst_49 : f32 to vector<8x512xf32>
    %165 = arith.maximumf %163, %164 : vector<8x512xf32>
    %c32_50 = arith.constant 32 : index
    %c0_51 = arith.constant 0 : index
    %166 = vector.load %arg3[%c32_50, %c0_51] : memref<40x128xf32, #tpu.memory_space<vmem>>, vector<3x8xf32>
    %c32_52 = arith.constant 32 : index
    %c8_53 = arith.constant 8 : index
    %167 = vector.load %arg3[%c32_52, %c8_53] : memref<40x128xf32, #tpu.memory_space<vmem>>, vector<3x1xf32>
    %cst_54 = arith.constant dense<0.000000e+00> : vector<3x512xf32>
    %168 = tpu.matmul %166, %165, %cst_54 {dimension_numbers = #tpu.dot_dimension_numbers<[1], [0], [0], [1], [0, 0, 1, 1], [], []>} : vector<3x8xf32>, vector<8x512xf32>, vector<3x512xf32> -> vector<3x512xf32>
    %169 = vector.broadcast %167 : vector<3x1xf32> to vector<3x512xf32>
    %170 = arith.addf %168, %169 : vector<3x512xf32>
    %171 = vector.extract_strided_slice %170 {offsets = [0, 0], sizes = [3, 256], strides = [1, 1]} : vector<3x512xf32> to vector<3x256xf32>
    %c0_55 = arith.constant 0 : index
    %c0_56 = arith.constant 0 : index
    %c0_57 = arith.constant 0 : index
    %172 = vector.load %arg4[%c0_55, %c0_56, %c0_57] : memref<2x3x256xf32, #tpu.memory_space<vmem>>, vector<1x3x256xf32>
    %173 = vector.shape_cast %172 : vector<1x3x256xf32> to vector<3x256xf32>
    %174 = vector.shape_cast %171 : vector<3x256xf32> to vector<1x3x256xf32>
    tpu.vector_store %arg4[%c0_55, %c0_56, %c0_57], %174 {strides = array<i32>} : memref<2x3x256xf32, #tpu.memory_space<vmem>>, vector<1x3x256xf32>,
    %175 = vector.extract_strided_slice %170 {offsets = [0, 256], sizes = [3, 256], strides = [1, 1]} : vector<3x512xf32> to vector<3x256xf32>
    %c1_58 = arith.constant 1 : index
    %c0_59 = arith.constant 0 : index
    %c0_60 = arith.constant 0 : index
    %176 = vector.load %arg4[%c1_58, %c0_59, %c0_60] : memref<2x3x256xf32, #tpu.memory_space<vmem>>, vector<1x3x256xf32>
    %177 = vector.shape_cast %176 : vector<1x3x256xf32> to vector<3x256xf32>
    %178 = vector.shape_cast %175 : vector<3x256xf32> to vector<1x3x256xf32>
    tpu.vector_store %arg4[%c1_58, %c0_59, %c0_60], %178 {strides = array<i32>} : memref<2x3x256xf32, #tpu.memory_space<vmem>>, vector<1x3x256xf32>,
    return
  }
  func.func @transform_0(%arg0: i32) -> (i32, i32, i32) {
    %c0_i32 = arith.constant 0 : i32
    %c0_i32_0 = arith.constant 0 : i32
    %c0_i32_1 = arith.constant 0 : i32
    %c0_i32_2 = arith.constant 0 : i32
    return %c0_i32, %c0_i32_0, %c0_i32_1 : i32, i32, i32
  }
  func.func @transform_1(%arg0: i32) -> (i32, i32) {
    %c0_i32 = arith.constant 0 : i32
    %c0_i32_0 = arith.constant 0 : i32
    %c0_i32_1 = arith.constant 0 : i32
    return %c0_i32, %c0_i32_0 : i32, i32
  }
  func.func @transform_2(%arg0: i32) -> (i32, i32) {
    %c0_i32 = arith.constant 0 : i32
    %c0_i32_0 = arith.constant 0 : i32
    %c0_i32_1 = arith.constant 0 : i32
    return %c0_i32, %c0_i32_0 : i32, i32
  }
  func.func @transform_3(%arg0: i32) -> (i32, i32, i32) {
    %c0_i32 = arith.constant 0 : i32
    %c0_i32_0 = arith.constant 0 : i32
    %c0_i32_1 = arith.constant 0 : i32
    %c0_i32_2 = arith.constant 0 : i32
    return %c0_i32, %c0_i32_0, %c0_i32_1 : i32, i32, i32
  }
}

</mosaic_0001>

<bundles_post_ra>
// kernel: tpu_custom_call.1
= control target key start
LH: loop header
LB: loop body
LE: loop exit
PB: predicated region body
PF: predicated region fallthrough
CT: control target
= control target key end

     0   :  { %8 = vsyncpa [#allocation3], 0  ;;  %s2115_s0 = inlined_call_operand.hbm [shape: f32[2,8,256], index: 0, kind: input, shape index: {}]   ;;  %s2116_s1 = inlined_call_operand.hbm [shape: f32[72,512], index: 1, kind: input, shape index: {}]   ;;  %s2117_s2 = inlined_call_operand.hbm [shape: f32[40,128], index: 2, kind: input, shape index: {}]   ;;  %s2118_s3 = inlined_call_operand.vmem [shape: f32[2,3,256], index: 3, kind: output, shape index: {}]  }
   0x1   :  { %9 = vsyncpa [#allocation5], 0  ;;  %s1442_s12 = smov [#allocation4]  }
   0x2   :  { %s27_s13 = sshll.u32 %s1442_s12, 4  ;;  %s28_s13 = int_to_ptr.vmem [resolvable:$true] %s27_s13 }
   0x3   :  { %s1386_s14 = scalar_lea.vmem %s28_s13, 4608  ;;  %p1391_p1 = scmp.lt.s32.totalorder %s28_s13, %s28_s13 }
   0x4   :  { %p1387_p0 = scmp.ne.s32.totalorder %s28_s13, %s1386_s14  ;;  %p1392_p2 = scmp.lt.s32.totalorder %s1386_s14, %s1386_s14 }
   0x6   :  { %p1393_p3 = por %p1392_p2, %p1391_p1 }
   0x8   :  { %p1394_p4 = pnand %p1393_p3, %p1387_p0 }
   0xa   :  { %1397 = shalt.err (!%p1394_p4)
}
   0xb   :  { %s1443_s15 = smov 512   ;;  %s1444_s16 = smov 32  }
   0xc   :  { %33 = dma.hbm_to_vmem [thread:$0]  %s2116_s1, 4608, %s28_s13, [#allocation5], %s1443_s15, %s1443_s15, %s1444_s16  }
   0xd   :  { %s1445_s19 = smov [#allocation2]  }
   0xe   :  { %s15_s20 = sshll.u32 %s1445_s19, 4  ;;  %s16_s20 = int_to_ptr.vmem [resolvable:$true] %s15_s20 }
   0xf   :  { %s1406_s21 = scalar_lea.vmem %s16_s20, 512  ;;  %p1411_p6 = scmp.lt.s32.totalorder %s16_s20, %s16_s20 }
  0x10   :  { %p1407_p5 = scmp.ne.s32.totalorder %s16_s20, %s1406_s21  ;;  %p1412_p7 = scmp.lt.s32.totalorder %s1406_s21, %s1406_s21 }
  0x12   :  { %p1413_p8 = por %p1412_p7, %p1411_p6 }
  0x14   :  { %p1414_p9 = pnand %p1413_p8, %p1407_p5 }
  0x16   :  { %1417 = shalt.err (!%p1414_p9)
}
  0x17   :  { %s1446_s22 = smov 256   ;;  %s1447_s23 = smov 16  }
  0x18   :  { %21 = dma.hbm_to_vmem [thread:$0]  %s2115_s0, 512, %s16_s20, [#allocation3], %s1446_s22, %s1446_s22, %s1447_s23  }
  0x19   :  { %s1448_s26 = smov [#allocation6]  }
  0x1a   :  { %s39_s27 = sshll.u32 %s1448_s26, 4  ;;  %s40_s27 = int_to_ptr.vmem [resolvable:$true] %s39_s27 }
  0x1b   :  { %s1426_s1 = scalar_lea.vmem %s40_s27, 640  ;;  %p1431_p11 = scmp.lt.s32.totalorder %s40_s27, %s40_s27 }
  0x1c   :  { %p1427_p10 = scmp.ne.s32.totalorder %s40_s27, %s1426_s1  ;;  %p1432_p12 = scmp.lt.s32.totalorder %s1426_s1, %s1426_s1 }
  0x1e   :  { %p1433_p13 = por %p1432_p12, %p1431_p11 }
  0x20   :  { %p1434_p0 = pnand %p1433_p13, %p1427_p10 }
  0x22   :  { %1437 = shalt.err (!%p1434_p0)
}
  0x23   :  { %s1449_s28 = smov 128   ;;  %s1450_s29 = smov 8  }
  0x24   :  { %45 = dma.hbm_to_vmem [thread:$0]  %s2117_s2, 640, %s40_s27, [#allocation5], %s1449_s28, %s1449_s28, %s1450_s29  }
  0x25   :  { %1438 = dma.done.wait [#allocation3], 512  }
  0x26   :  { %1439 = vsyncadd [#allocation3], 4294966784 }
  0x27   :  { %1440 = dma.done.wait [#allocation5], 5248  }
  0x28   :  { %1441 = vsyncadd [#allocation5], 4294962048  ;;  %v1507_v0 = vld [vmem:[#allocation2 + $0x10] sm:$0xff]  ;;  %s1451_s0 = smov 76   ;;  %s1452_s5 = smov 52   ;;  %v1511_v1 = vld [vmem:[#allocation2 + $0x18] sm:$0xff]  ;;  %v60_v8 = vlaneseq }
  0x29   :  { %223 = vrot.lane.b32.xlu1 %v1507_v0, %s1451_s0  ;;  %261 = vrot.lane.b32.xlu0 %v1507_v0, %s1452_s5  ;;  %s1453_s6 = smov 64   ;;  %v1517_v2 = vld [vmem:[#allocation2 + $0x8] sm:$0xff]  ;;  %v1521_v3 = vld [vmem:[#allocation2] sm:$0xff]  ;;  %s1454_s2 = smov 12   ;;  %v1462_v4 = vmov 0.0   ;;  %vm720_vm0 = vcmask 1043456  }
  0x2a   :  { %s1455_s7 = smov 116   ;;  %s1456_s8 = smov 26   ;;  %421 = vmatprep.mubr.f32.mxu0 %v1462_v4  ;;  %510 = vmatprep.mubr.f32.mxu1 %v1462_v4  ;;  %v721_v5 = vsel %vm720_vm0, %v1521_v3, 0.0  ;;  %v722_v6 = vsel %vm720_vm0, %v1517_v2, 0.0  ;;  %v728_v9 = vsel %vm720_vm0, %v1507_v0, 0.0  ;;  %v729_v10 = vsel %vm720_vm0, %v1511_v1, 0.0 }
  0x2b   :  { %s1457_s9 = smov 38   ;;  %s1458_s10 = smov 6   ;;  %v723_v7 = vadd.f32 %v722_v6, %v721_v5  ;;  %v730_v11 = vadd.f32 %v729_v10, %v728_v9  ;;  %v1597_v12 = vand.u32 127, %v60_v8  ;;  %v333_v15 = vld [vmem:[#allocation4 + $0x108] sm:$0xff]  ;;  %v1604_v18 = vshrl.u32 %v60_v8, 7  ;;  %v332_v25 = vld [vmem:[#allocation4 + $0x100] sm:$0xff] }
  0x2c   :  { %s1459_s11 = smov 122   ;;  %s1460_s12 = smov 96   ;;  %v325_v29 = vld [vmem:[#allocation4 + $0xe8] sm:$0xff]  ;;  %v324_v35 = vld [vmem:[#allocation4 + $0xe0] sm:$0xff]  ;;  %v335_v58 = vld [vmem:[#allocation4 + $0x118] sm:$0xff]  ;;  %vm344_vm15 = vcmask 588800  }
  0x2d   :  { %225 = vrot.lane.b32.xlu1 %v1511_v1, %s1451_s0  ;;  %263 = vrot.lane.b32.xlu0 %v1511_v1, %s1452_s5  ;;  %s1461_s13 = smov 90   ;;  %s1463_s14 = smov 102   ;;  %vm265_vm1 = vcmp.lt.s32.totalorder %v1597_v12, 52  ;;  %vm252_vm2 = vcmp.lt.s32.totalorder %v1597_v12, 64  ;;  %vm227_vm3 = vcmp.lt.s32.totalorder %v1597_v12, 76  ;;  %vm62_vm4 = vcmp.lt.s32.totalorder %v1604_v18, 4 }
  0x2e   :  { %v1629_v36 = vld [vmem:[#allocation6] sm:$0xff]  ;;  %s1464_s15 = smov 54   ;;  %vm290_vm5 = vcmp.lt.s32.totalorder %v1597_v12, 12  ;;  %vm303_vm6 = vcmp.lt.s32.totalorder %v1597_v12, 116  ;;  %v313_v46 = vld [vmem:[#allocation4 + $0xc8] sm:$0xff]  ;;  %v334_v59 = vld [vmem:[#allocation4 + $0x110] sm:$0xff] }
  0x2f   :  { %v312_v53 = vld [vmem:[#allocation4 + $0xc0] sm:$0xff]  ;;  %vm214_vm7 = vcmp.lt.s32.totalorder %v1597_v12, 26  ;;  %v275_v63 = vld [vmem:[#allocation4 + $0xa8] sm:$0xff]  ;;  %vm176_vm8 = vcmp.lt.s32.totalorder %v1597_v12, 38  ;;  %vm189_vm9 = vcmp.lt.s32.totalorder %v1597_v12, 32  ;;  %vm138_vm10 = vcmp.lt.s32.totalorder %v1597_v12, 6 }
  0x30   :  { %v274_v9 = vld [vmem:[#allocation4 + $0xa0] sm:$0xff]  ;;  %vm151_vm11 = vcmp.lt.s32.totalorder %v1597_v12, 122  ;;  %vm100_vm12 = vcmp.lt.s32.totalorder %v1597_v12, 96  ;;  %vm113_vm13 = vcmp.lt.s32.totalorder %v1597_v12, 90  ;;  %vm73_vm14 = vcmp.lt.s32.totalorder %v1597_v12, 102 }
  0x31   :  { %250 = vrot.lane.b32.xlu1 %v1511_v1, %s1453_s6  ;;  %248 = vrot.lane.b32.xlu0 %v1507_v0, %s1453_s6 }
  0x35   :  { %221 = vrot.lane.b32.xlu1 %v1517_v2, %s1451_s0  ;;  %259 = vrot.lane.b32.xlu0 %v1517_v2, %s1452_s5 }
  0x39   :  { %246 = vrot.lane.b32.xlu0 %v1517_v2, %s1453_s6  ;;  %282 = vrot.lane.b32.xlu1 %v1521_v3, %s1454_s2 }
  0x3d   :  { %284 = vrot.lane.b32.xlu0 %v1517_v2, %s1454_s2  ;;  %297 = vrot.lane.b32.xlu1 %v1517_v2, %s1455_s7 }
  0x41   :  { %299 = vrot.lane.b32.xlu0 %v1507_v0, %s1455_s7  ;;  %288 = vrot.lane.b32.xlu1 %v1511_v1, %s1454_s2 }
  0x45   :  { %295 = vrot.lane.b32.xlu0 %v1521_v3, %s1455_s7  ;;  %244 = vrot.lane.b32.xlu1 %v1521_v3, %s1453_s6 }
  0x49   :  { %257 = vrot.lane.b32.xlu0 %v1521_v3, %s1452_s5  ;;  %208 = vrot.lane.b32.xlu1 %v1517_v2, %s1456_s8 }
  0x4d   :  { %210 = vrot.lane.b32.xlu0 %v1507_v0, %s1456_s8  ;;  %219 = vrot.lane.b32.xlu1 %v1521_v3, %s1451_s0 }
  0x51   :  { %206 = vrot.lane.b32.xlu0 %v1521_v3, %s1456_s8  ;;  %170 = vrot.lane.b32.xlu1 %v1517_v2, %s1457_s9 }
  0x55   :  { %172 = vrot.lane.b32.xlu0 %v1507_v0, %s1457_s9  ;;  %183 = vrot.lane.b32.xlu1 %v1517_v2, %s1444_s16 }
  0x59   :  { %185 = vrot.lane.b32.xlu0 %v1507_v0, %s1444_s16  ;;  %168 = vrot.lane.b32.xlu1 %v1521_v3, %s1457_s9 }
  0x5d   :  { %181 = vrot.lane.b32.xlu0 %v1521_v3, %s1444_s16  ;;  %130 = vrot.lane.b32.xlu1 %v1521_v3, %s1458_s10 }
  0x61   :  { %132 = vrot.lane.b32.xlu0 %v1517_v2, %s1458_s10  ;;  %145 = vrot.lane.b32.xlu1 %v1517_v2, %s1459_s11 }
  0x65   :  { %147 = vrot.lane.b32.xlu0 %v1507_v0, %s1459_s11  ;;  %136 = vrot.lane.b32.xlu1 %v1511_v1, %s1458_s10 }
  0x69   :  { %143 = vrot.lane.b32.xlu0 %v1521_v3, %s1459_s11  ;;  %92 = vrot.lane.b32.xlu1 %v1521_v3, %s1460_s12 }
  0x6d   :  { %94 = vrot.lane.b32.xlu0 %v1517_v2, %s1460_s12  ;;  %105 = vrot.lane.b32.xlu1 %v1521_v3, %s1461_s13 }
  0x71   :  { %107 = vrot.lane.b32.xlu0 %v1517_v2, %s1461_s13  ;;  %98 = vrot.lane.b32.xlu1 %v1511_v1, %s1460_s12 }
  0x75   :  { %111 = vrot.lane.b32.xlu0 %v1511_v1, %s1461_s13  ;;  %63 = vrot.lane.b32.xlu1 %v1521_v3, %s1463_s14 }
  0x79   :  { %65 = vrot.lane.b32.xlu0 %v1517_v2, %s1463_s14  ;;  %69 = vrot.lane.b32.xlu1 %v1511_v1, %s1463_s14 }
  0x98   :  { %724 = vadd.xlane.f32.xlu0 %v723_v7 }
  0x9b   :  { %v224_v13 = vpop.permute.xlu1 %223  ;;  %v262_v14 = vpop.permute.xlu0 %261 }
  0x9d   :  { %731 = vadd.xlane.f32.xlu1 %v730_v11 }
  0x9f   :  { %v1600_v16 = vpop.permute.xlu1 %225  ;;  %v1602_v17 = vpop.permute.xlu0 %263 }
  0xa0   :  { %v266_v19 = vsel %vm265_vm1, %v262_v14, %v1602_v17  ;;  %v1620_v24 = vsel %vm227_vm3, %v224_v13, %v1600_v16 }
  0xa1   :  { %v337_v20 = vmul.f32 %v333_v15, %v266_v19 }
  0xa3   :  { %v1611_v21 = vpop.permute.xlu1 %250  ;;  %371 = vmatprep.subr.mxu0 %v337_v20  ;;  %v249_v22 = vpop.permute.xlu0 %248 }
  0xa4   :  { %v253_v23 = vsel %vm252_vm2, %v249_v22, %v1611_v21 }
  0xa5   :  { %v321_v26 = vsel %vm62_vm4, %v1620_v24, %v253_v23  ;;  %v270_v60 = vsel %vm62_vm4, %v253_v23, %v266_v19  ;;  %v326_v23 = vld [vmem:[#allocation4 + $0xf0] sm:$0xff] }
  0xa6   :  { %v329_v32 = vmul.f32 %v325_v29, %v321_v26  ;;  %v278_v20 = vmul.f32 %v274_v9, %v270_v60 }
  0xa7   :  { %v1625_v27 = vpop.permute.xlu1 %221  ;;  %v260_v28 = vpop.permute.xlu0 %259 }
  0xa8   :  { %v267_v30 = vsel %vm265_vm1, %v260_v28, %v262_v14  ;;  %v1634_v37 = vsel %vm227_vm3, %v1625_v27, %v224_v13 }
  0xa9   :  { %v336_v31 = vmul.f32 %v332_v25, %v267_v30 }
  0xab   :  { %372 = vmatpush1.msra.mxu0 %v336_v31  ;;  %v247_v33 = vpop.permute.xlu0 %246  ;;  %v283_v34 = vpop.permute.xlu1 %282 }
  0xac   :  { %v254_v38 = vsel %vm252_vm2, %v247_v33, %v249_v22  ;;  %373 = vmatprep.subr.mxu0 %v329_v32  ;;  %v327_v22 = vld [vmem:[#allocation4 + $0xf8] sm:$0xff] }
  0xad   :  { %v1640_v39 = vsel %vm62_vm4, %v254_v38, %v267_v30  ;;  %v320_v40 = vsel %vm62_vm4, %v1634_v37, %v254_v38 }
  0xae   :  { %v328_v41 = vmul.f32 %v324_v35, %v320_v40  ;;  %738 = vrot.lane.b32.xlu0 %v1629_v36, %s1464_s15  ;;  %286 = vrot.lane.b32.xlu1 %v1507_v0, %s1454_s2  ;;  %v236_v35 = vld [vmem:[#allocation4 + $0x80] sm:$0xff] }
  0xaf   :  { %v1648_v42 = vpop.permute.xlu0 %284  ;;  %v298_v43 = vpop.permute.xlu1 %297 }
  0xb0   :  { %374 = vmatpush1.msra.mxu0 %v328_v41  ;;  %v293_v47 = vsel %vm290_vm5, %v283_v34, %v1648_v42 }
  0xb2   :  { %301 = vrot.lane.b32.xlu0 %v1511_v1, %s1455_s7  ;;  %212 = vrot.lane.b32.xlu1 %v1511_v1, %s1456_s8 }
  0xb3   :  { %v1656_v44 = vpop.permute.xlu0 %299  ;;  %v1658_v45 = vpop.permute.xlu1 %288 }
  0xb4   :  { %v305_v48 = vsel %vm303_vm6, %v298_v43, %v1656_v44  ;;  %v294_v54 = vsel %vm290_vm5, %v1658_v45, %v283_v34 }
  0xb5   :  { %v309_v49 = vsel %vm62_vm4, %v293_v47, %v305_v48 }
  0xb6   :  { %v317_v50 = vmul.f32 %v313_v46, %v309_v49  ;;  %174 = vrot.lane.b32.xlu0 %v1511_v1, %s1457_s9  ;;  %187 = vrot.lane.b32.xlu1 %v1511_v1, %s1444_s16  ;;  %v199_v49 = vld [vmem:[#allocation4 + $0x68] sm:$0xff]  ;;  %s1470_s16 = smov 48  }
  0xb7   :  { %v1672_v51 = vpop.permute.xlu0 %295  ;;  %v245_v52 = vpop.permute.xlu1 %244 }
  0xb8   :  { %v306_v55 = vsel %vm303_vm6, %v1672_v51, %v298_v43  ;;  %375 = vmatprep.subr.mxu0 %v317_v50  ;;  %v255_v5 = vsel %vm252_vm2, %v245_v52, %v247_v33  ;;  %v256_v6 = vsel %vm252_vm2, %v1611_v21, %v245_v52  ;;  %v237_v21 = vld [vmem:[#allocation4 + $0x88] sm:$0xff]  ;;  %vm734_vm2 = vcmask 7168  }
  0xb9   :  { %v308_v56 = vsel %vm62_vm4, %v294_v54, %v306_v55 }
  0xba   :  { %v316_v57 = vmul.f32 %v312_v53, %v308_v56  ;;  %134 = vrot.lane.b32.xlu0 %v1507_v0, %s1458_s10  ;;  %149 = vrot.lane.b32.xlu1 %v1511_v1, %s1459_s11  ;;  %v198_v56 = vld [vmem:[#allocation4 + $0x60] sm:$0xff] }
  0xbb   :  { %v258_v61 = vpop.permute.xlu0 %257  ;;  %v209_v62 = vpop.permute.xlu1 %208 }
  0xbc   :  { %v269_v7 = vsel %vm265_vm1, %v1602_v17, %v258_v61  ;;  %376 = vmatpush1.msra.mxu0 %v316_v57  ;;  %v268_v8 = vsel %vm265_vm1, %v258_v61, %v260_v28  ;;  %vm1465_vm1 = vmmov 0  }
  0xbd   :  { %v271_v10 = vsel %vm62_vm4, %v256_v6, %v269_v7  ;;  %v1703_v11 = vsel %vm62_vm4, %v255_v5, %v268_v8  ;;  %v339_v13 = vmul.f32 %v335_v58, %v268_v8  ;;  %v338_v14 = vmul.f32 %v334_v59, %v269_v7 }
  0xbe   :  { %v279_v15 = vmul.f32 %v275_v63, %v271_v10  ;;  %96 = vrot.lane.b32.xlu0 %v1507_v0, %s1460_s12  ;;  %109 = vrot.lane.b32.xlu1 %v1507_v0, %s1461_s13 }
  0xbf   :  { %460 = vmatprep.subr.mxu1 %v339_v13  ;;  %v1709_v17 = vpop.permute.xlu0 %210  ;;  %v220_v19 = vpop.permute.xlu1 %219 }
  0xc0   :  { %v216_v25 = vsel %vm214_vm7, %v209_v62, %v1709_v17  ;;  %v1717_v26 = vsel %vm227_vm3, %v220_v19, %v1625_v27  ;;  %v231_v28 = vsel %vm227_vm3, %v1600_v16, %v220_v19  ;;  %461 = vmatpush1.msra.mxu1 %v338_v14  ;;  %377 = vmatprep.subr.mxu0 %v279_v15  ;;  %v160_v15 = vld [vmem:[#allocation4 + $0x40] sm:$0xff]  ;;  %vm740_vm3 = vcmask 31744  }
  0xc1   :  { %v233_v29 = vsel %vm62_vm4, %v216_v25, %v231_v28  ;;  %v322_v30 = vsel %vm62_vm4, %v231_v28, %v256_v6  ;;  %v323_v31 = vsel %vm62_vm4, %v1717_v26, %v255_v5  ;;  %378 = vmatpush1.msra.mxu0 %v278_v20  ;;  %v161_v6 = vld [vmem:[#allocation4 + $0x48] sm:$0xff] }
  0xc2   :  { %v241_v32 = vmul.f32 %v237_v21, %v233_v29  ;;  %v331_v27 = vmul.f32 %v327_v22, %v323_v31  ;;  %v330_v33 = vmul.f32 %v326_v23, %v322_v30  ;;  %67 = vrot.lane.b32.xlu0 %v1507_v0, %s1463_s14  ;;  %v123_v30 = vld [vmem:[#allocation4 + $0x28] sm:$0xff] }
  0xc3   :  { %v1731_v16 = vpop.permute.xlu0 %206  ;;  %v171_v34 = vpop.permute.xlu1 %170 }
  0xc4   :  { %v217_v38 = vsel %vm214_vm7, %v1731_v16, %v209_v62  ;;  %379 = vmatprep.subr.mxu0 %v241_v32  ;;  %462 = vmatprep.subr.mxu1 %v331_v27 }
  0xc5   :  { %v232_v40 = vsel %vm62_vm4, %v217_v38, %v1620_v24  ;;  %463 = vmatpush1.msra.mxu1 %v330_v33  ;;  %v122_v38 = vld [vmem:[#allocation4 + $0x20] sm:$0xff] }
  0xc6   :  { %v240_v41 = vmul.f32 %v236_v35, %v232_v40 }
  0xc7   :  { %v1739_v43 = vpop.permute.xlu0 %172  ;;  %v184_v46 = vpop.permute.xlu1 %183 }
  0xc8   :  { %380 = vmatpush1.msra.mxu0 %v240_v41  ;;  %v178_v50 = vsel %vm176_vm8, %v171_v34, %v1739_v43 }
  0xcb   :  { %v1743_v47 = vpop.permute.xlu0 %185  ;;  %v1745_v48 = vpop.permute.xlu1 %168 }
  0xcc   :  { %v191_v24 = vsel %vm189_vm9, %v184_v46, %v1743_v47  ;;  %v179_v57 = vsel %vm176_vm8, %v1745_v48, %v171_v34 }
  0xcd   :  { %v195_v52 = vsel %vm62_vm4, %v178_v50, %v191_v24 }
  0xce   :  { %v203_v53 = vmul.f32 %v199_v49, %v195_v52  ;;  %v85_v52 = vld [vmem:[#allocation4 + $0x8] sm:$0xff] }
  0xcf   :  { %v1755_v54 = vpop.permute.xlu0 %181  ;;  %v131_v55 = vpop.permute.xlu1 %130 }
  0xd0   :  { %v192_v58 = vsel %vm189_vm9, %v1755_v54, %v184_v46  ;;  %381 = vmatprep.subr.mxu0 %v203_v53  ;;  %v84_v53 = vld [vmem:[#allocation4] sm:$0xff] }
  0xd1   :  { %v194_v59 = vsel %vm62_vm4, %v179_v57, %v192_v58 }
  0xd2   :  { %v202_v60 = vmul.f32 %v198_v56, %v194_v59 }
  0xd3   :  { %v1765_v61 = vpop.permute.xlu0 %132  ;;  %v146_v62 = vpop.permute.xlu1 %145 }
  0xd4   :  { %382 = vmatpush1.msra.mxu0 %v202_v60  ;;  %v141_v7 = vsel %vm138_vm10, %v131_v55, %v1765_v61 }
  0xd7   :  { %v1769_v63 = vpop.permute.xlu0 %147  ;;  %v1771_v5 = vpop.permute.xlu1 %136 }
  0xd8   :  { %v153_v8 = vsel %vm151_vm11, %v146_v62, %v1769_v63  ;;  %v142_v19 = vsel %vm138_vm10, %v1771_v5, %v131_v55 }
  0xd9   :  { %v157_v9 = vsel %vm62_vm4, %v141_v7, %v153_v8 }
  0xda   :  { %v165_v10 = vmul.f32 %v161_v6, %v157_v9 }
  0xdb   :  { %v1781_v13 = vpop.permute.xlu0 %143  ;;  %v93_v14 = vpop.permute.xlu1 %92 }
  0xdc   :  { %v154_v20 = vsel %vm151_vm11, %v1781_v13, %v146_v62  ;;  %383 = vmatprep.subr.mxu0 %v165_v10  ;;  %v1838_v62 = vld [vmem:[#allocation6 + $0x8] sm:$0xff] }
  0xdd   :  { %v156_v21 = vsel %vm62_vm4, %v142_v19, %v154_v20 }
  0xde   :  { %v164_v22 = vmul.f32 %v160_v15, %v156_v21 }
  0xdf   :  { %v1791_v23 = vpop.permute.xlu0 %94  ;;  %v106_v25 = vpop.permute.xlu1 %105 }
  0xe0   :  { %384 = vmatpush1.msra.mxu0 %v164_v22  ;;  %v103_v31 = vsel %vm100_vm12, %v93_v14, %v1791_v23  ;;  %v315_v22 = vld [vmem:[#allocation4 + $0xd8] sm:$0xff] }
  0xe3   :  { %v1795_v28 = vpop.permute.xlu0 %107  ;;  %v1797_v29 = vpop.permute.xlu1 %98 }
  0xe4   :  { %v116_v32 = vsel %vm113_vm13, %v106_v25, %v1795_v28  ;;  %v104_v40 = vsel %vm100_vm12, %v1797_v29, %v93_v14 }
  0xe5   :  { %v119_v27 = vsel %vm62_vm4, %v103_v31, %v116_v32  ;;  %v277_v32 = vld [vmem:[#allocation4 + $0xb8] sm:$0xff] }
  0xe6   :  { %v127_v33 = vmul.f32 %v123_v30, %v119_v27 }
  0xe7   :  { %v1807_v34 = vpop.permute.xlu0 %111  ;;  %v64_v35 = vpop.permute.xlu1 %63 }
  0xe8   :  { %v117_v41 = vsel %vm113_vm13, %v1807_v34, %v106_v25  ;;  %385 = vmatprep.subr.mxu0 %v127_v33  ;;  %v314_v25 = vld [vmem:[#allocation4 + $0xd0] sm:$0xff] }
  0xe9   :  { %v118_v46 = vsel %vm62_vm4, %v104_v40, %v117_v41  ;;  %v238_v41 = vld [vmem:[#allocation4 + $0x90] sm:$0xff] }
  0xea   :  { %v126_v49 = vmul.f32 %v122_v38, %v118_v46  ;;  %v276_v38 = vld [vmem:[#allocation4 + $0xb0] sm:$0xff] }
  0xeb   :  { %v1818_v50 = vpop.permute.xlu0 %65  ;;  %v1820_v24 = vpop.permute.xlu1 %69 }
  0xec   :  { %v76_v55 = vsel %vm73_vm14, %v64_v35, %v1818_v50  ;;  %v77_v56 = vsel %vm73_vm14, %v1820_v24, %v64_v35  ;;  %386 = vmatpush1.msra.mxu0 %v126_v49  ;;  %v281_v49 = vmul.f32 %v277_v32, %v1640_v39 }
  0xed   :  { %v81_v57 = vsel %vm62_vm4, %v1517_v2, %v76_v55  ;;  %v80_v58 = vsel %vm62_vm4, %v1521_v3, %v77_v56  ;;  %v1843_v2 = vld [vmem:[#allocation6 + $0x10] sm:$0xff]  ;;  %v1848_v3 = vld [vmem:[#allocation6 + $0x18] sm:$0xff]  ;;  %v280_v55 = vmul.f32 %v276_v38, %v1703_v11 }
  0xee   :  { %v89_v59 = vmul.f32 %v85_v52, %v81_v57  ;;  %v88_v60 = vmul.f32 %v84_v53, %v80_v58 }
  0xf0   :  { %387 = vmatprep.subr.mxu0 %v89_v59  ;;  %v200_v59 = vld [vmem:[#allocation4 + $0x70] sm:$0xff] }
  0xf1   :  { %388 = vmatpush1.msra.mxu0 %v88_v60 }
  0xf2   :  { %1286 = vmatmul.mubr.msk.f32.vlgmr.msra.gmra.mxu0 %vm344_vm15, %v1629_v36  ;;  %1306 = vmatprep.subr.mxu0 %v1462_v4 }
  0xf3   :  { %427 = vmatprep.mubr.f32.mxu0 %v1462_v4 }
  0xf6   :  { %1287 = vmatmul.mubr.msk.f32.gmra.mxu0 %vm344_vm15, %v1838_v62 }
  0xf7   :  { %433 = vmatprep.mubr.f32.mxu0 %v1462_v4 }
  0xfa   :  { %1288 = vmatmul.mubr.msk.f32.gmra.mxu0 %vm344_vm15, %v1843_v2 }
  0xfb   :  { %439 = vmatprep.mubr.f32.mxu0 %v1462_v4 }
  0xfe   :  { %1289 = vmatmul.mubr.msk.f32.gmra.mxu0 %vm344_vm15, %v1848_v3 }
  0xff   :  { %1308 = vmatprep.mubr.msk.f32.mxu0 %vm1465_vm1, %v1462_v4 }
 0x121   :  { %v725_v6 = vpop.xlane.xlu0 %724 }
 0x122   :  { %v727_v9 = vmul.f32 0.00390625, %v725_v6 }
 0x125   :  { %v739_v7 = vpop.permute.xlu0 %738 }
 0x126   :  { %v732_v8 = vpop.xlane.xlu1 %731 }
 0x127   :  { %v733_v10 = vmul.f32 0.00390625, %v732_v8 }
 0x129   :  { %v735_v14 = vsel %vm734_vm2, %v727_v9, %v733_v10  ;;  %v302_v15 = vpop.permute.xlu0 %301  ;;  %v163_v9 = vld [vmem:[#allocation4 + $0x58] sm:$0xff]  ;;  %v162_v10 = vld [vmem:[#allocation4 + $0x50] sm:$0xff] }
 0x12a   :  { %v304_v19 = vsel %vm303_vm6, %v1656_v44, %v302_v15  ;;  %v307_v20 = vsel %vm303_vm6, %v302_v15, %v1672_v51  ;;  %v287_v21 = vpop.permute.xlu1 %286  ;;  %1307 = vmatpush3.msk.msra.mxu0 %vm720_vm0, %v735_v14  ;;  %vm816_vm0 = vcmask 15360  }
 0x12b   :  { %v291_v30 = vsel %vm290_vm5, %v287_v21, %v1658_v45  ;;  %v292_v31 = vsel %vm290_vm5, %v1648_v42, %v287_v21  ;;  %1309 = vmatmul.mubr.msk.f32.vlgmr.msra.gmra.mxu0 %vm740_vm3, %v739_v7  ;;  %v239_v45 = vld [vmem:[#allocation4 + $0x98] sm:$0xff]  ;;  %vm928_vm5 = vcmask 261120  }
 0x12c   :  { %v310_v44 = vsel %vm62_vm4, %v292_v31, %v304_v19  ;;  %v311_v51 = vsel %vm62_vm4, %v291_v30, %v307_v20  ;;  %995 = vmatprep.mubr.f32.mxu0 %v1462_v4  ;;  %v124_v30 = vld [vmem:[#allocation4 + $0x30] sm:$0xff] }
 0x12d   :  { %v175_v27 = vpop.permute.xlu0 %174  ;;  %v319_v33 = vmul.f32 %v315_v22, %v311_v51  ;;  %v318_v35 = vmul.f32 %v314_v25, %v310_v44  ;;  %v125_v25 = vld [vmem:[#allocation4 + $0x38] sm:$0xff] }
 0x12e   :  { %v213_v40 = vpop.permute.xlu1 %212  ;;  %v177_v39 = vsel %vm176_vm8, %v1739_v43, %v175_v27 }
 0x12f   :  { %v215_v42 = vsel %vm214_vm7, %v1709_v17, %v213_v40  ;;  %v218_v46 = vsel %vm214_vm7, %v213_v40, %v1731_v16  ;;  %464 = vmatprep.subr.mxu1 %v319_v33  ;;  %v201_v16 = vld [vmem:[#allocation4 + $0x78] sm:$0xff] }
 0x130   :  { %v234_v52 = vsel %vm62_vm4, %v215_v42, %v1717_v26  ;;  %v235_v53 = vsel %vm62_vm4, %v218_v46, %v1634_v37  ;;  %465 = vmatpush1.msra.mxu1 %v318_v35  ;;  %v180_v26 = vsel %vm176_vm8, %v175_v27, %v1745_v48 }
 0x131   :  { %466 = vmatprep.subr.mxu1 %v281_v49  ;;  %v135_v17 = vpop.permute.xlu0 %134  ;;  %v243_v56 = vmul.f32 %v239_v45, %v235_v53  ;;  %v242_v57 = vmul.f32 %v238_v41, %v234_v52  ;;  %v1466_v53 = vmov 79  }
 0x132   :  { %v188_v58 = vpop.permute.xlu1 %187  ;;  %467 = vmatpush1.msra.mxu1 %v280_v55  ;;  %1351 = vset.pattern.permute.xlu1 %v1466_v53  ;;  %v1467_v55 = vmov 78  }
 0x133   :  { %v190_v37 = vsel %vm189_vm9, %v1743_v47, %v188_v58  ;;  %v193_v11 = vsel %vm189_vm9, %v188_v58, %v1755_v54  ;;  %468 = vmatprep.subr.mxu1 %v243_v56  ;;  %v139_v47 = vsel %vm138_vm10, %v135_v17, %v1771_v5  ;;  %v140_v54 = vsel %vm138_vm10, %v1765_v61, %v135_v17 }
 0x134   :  { %v196_v60 = vsel %vm62_vm4, %v177_v39, %v190_v37  ;;  %v197_v6 = vsel %vm62_vm4, %v180_v26, %v193_v11  ;;  %469 = vmatpush1.msra.mxu1 %v242_v57  ;;  %1350 = vset.pattern.permute.xlu0 %v1467_v55 }
 0x135   :  { %v97_v43 = vpop.permute.xlu0 %96  ;;  %v205_v7 = vmul.f32 %v201_v16, %v197_v6  ;;  %v204_v8 = vmul.f32 %v200_v59, %v196_v60 }
 0x136   :  { %v150_v48 = vpop.permute.xlu1 %149  ;;  %v101_v31 = vsel %vm100_vm12, %v97_v43, %v1797_v29  ;;  %v102_v44 = vsel %vm100_vm12, %v1791_v23, %v97_v43  ;;  %v87_v23 = vld [vmem:[#allocation4 + $0x18] sm:$0xff] }
 0x137   :  { %v152_v14 = vsel %vm151_vm11, %v1769_v63, %v150_v48  ;;  %v155_v15 = vsel %vm151_vm11, %v150_v48, %v1781_v13  ;;  %470 = vmatprep.subr.mxu1 %v205_v7 }
 0x138   :  { %v158_v19 = vsel %vm62_vm4, %v140_v54, %v152_v14  ;;  %v159_v20 = vsel %vm62_vm4, %v139_v47, %v155_v15  ;;  %471 = vmatpush1.msra.mxu1 %v204_v8  ;;  %v1468_v14 = vmov 72   ;;  %v1469_v15 = vmov 73  }
 0x139   :  { %v68_v5 = vpop.permute.xlu0 %67  ;;  %v167_v21 = vmul.f32 %v163_v9, %v159_v20  ;;  %v166_v22 = vmul.f32 %v162_v10, %v158_v19 }
 0x13a   :  { %v74_v61 = vsel %vm73_vm14, %v68_v5, %v1820_v24  ;;  %v75_v63 = vsel %vm73_vm14, %v1818_v50, %v68_v5  ;;  %v110_v13 = vpop.permute.xlu1 %109 }
 0x13b   :  { %v114_v51 = vsel %vm113_vm13, %v110_v13, %v1807_v34  ;;  %v115_v24 = vsel %vm113_vm13, %v1795_v28, %v110_v13  ;;  %472 = vmatprep.subr.mxu1 %v167_v21  ;;  %v83_v50 = vsel %vm62_vm4, %v1511_v1, %v74_v61  ;;  %v82_v34 = vsel %vm62_vm4, %v1507_v0, %v75_v63  ;;  %v86_v28 = vld [vmem:[#allocation4 + $0x10] sm:$0xff] }
 0x13c   :  { %v120_v29 = vsel %vm62_vm4, %v102_v44, %v115_v24  ;;  %v121_v32 = vsel %vm62_vm4, %v101_v31, %v114_v51  ;;  %473 = vmatpush1.msra.mxu1 %v166_v22  ;;  %v91_v33 = vmul.f32 %v87_v23, %v83_v50  ;;  %v90_v35 = vmul.f32 %v86_v28, %v82_v34 }
 0x13d   :  { %v129_v27 = vmul.f32 %v125_v25, %v121_v32  ;;  %v128_v12 = vmul.f32 %v124_v30, %v120_v29  ;;  %vm844_vm4 = vcmask 64512  }
 0x13f   :  { %474 = vmatprep.subr.mxu1 %v129_v27 }
 0x140   :  { %475 = vmatpush1.msra.mxu1 %v128_v12 }
 0x141   :  { %476 = vmatprep.subr.mxu1 %v91_v33 }
 0x142   :  { %477 = vmatpush1.msra.mxu1 %v90_v35 }
 0x143   :  { %1290 = vmatmul.mubr.msk.f32.vlgmr.msra.gmra.mxu1 %vm344_vm15, %v1629_v36  ;;  %1311 = vmatprep.subr.mxu1 %v1462_v4 }
 0x144   :  { %516 = vmatprep.mubr.f32.mxu1 %v1462_v4 }
 0x147   :  { %1291 = vmatmul.mubr.msk.f32.gmra.mxu1 %vm344_vm15, %v1838_v62 }
 0x148   :  { %522 = vmatprep.mubr.f32.mxu1 %v1462_v4 }
 0x14b   :  { %1292 = vmatmul.mubr.msk.f32.gmra.mxu1 %vm344_vm15, %v1843_v2 }
 0x14c   :  { %528 = vmatprep.mubr.f32.mxu1 %v1462_v4 }
 0x14f   :  { %1293 = vmatmul.mubr.msk.f32.gmra.mxu1 %vm344_vm15, %v1848_v3 }
 0x150   :  { %1313 = vmatprep.mubr.msk.f32.mxu1 %vm1465_vm1, %v1462_v4 }
 0x1b2   :  { %v1960_v0 = vpop.f32.mrf.mxu0 }
 0x1b4   :  { %v1962_v1 = vpop.f32.mrf.mxu0 }
 0x1b5   :  { %v535_v9 = vadd.f32 %v1962_v1, %v1960_v0 }
 0x1b6   :  { %v429_v18 = vpop.f32.mrf.mxu0 }
 0x1b8   :  { %v431_v38 = vpop.f32.mrf.mxu0 }
 0x1b9   :  { %v540_v57 = vadd.f32 %v431_v38, %v429_v18 }
 0x1ba   :  { %v435_v40 = vpop.f32.mrf.mxu0 }
 0x1bc   :  { %v437_v45 = vpop.f32.mrf.mxu0 }
 0x1bd   :  { %v545_v6 = vadd.f32 %v437_v45, %v435_v40 }
 0x1be   :  { %v1964_v41 = vpop.f32.mrf.mxu0 }
 0x1c0   :  { %v1966_v42 = vpop.f32.mrf.mxu0 }
 0x1c1   :  { %v550_v11 = vadd.f32 %v1966_v42, %v1964_v41 }
 0x1eb   :  { %v1968_v46 = vpop.f32.mrf.mxu0 }
 0x1ec   :  { %v817_v49 = vsel %vm816_vm0, %v1968_v46, 0.0 }
 0x1ed   :  { %818 = vadd.xlane.f32.xlu1 %v817_v49  ;;  %v1310_v52 = vpop.f32.mrf.mxu0 }
 0x203   :  { %v512_v17 = vpop.f32.mrf.mxu1 }
 0x204   :  { %v536_v10 = vadd.f32 %v535_v9, %v512_v17 }
 0x205   :  { %v514_v56 = vpop.f32.mrf.mxu1 }
 0x206   :  { %v537_v54 = vadd.f32 %v536_v10, %v514_v56 }
 0x207   :  { %v1972_v58 = vpop.f32.mrf.mxu1 }
 0x208   :  { %v541_v16 = vadd.f32 %v540_v57, %v1972_v58 }
 0x209   :  { %v1975_v59 = vpop.f32.mrf.mxu1 }
 0x20a   :  { %v542_v39 = vadd.f32 %v541_v16, %v1975_v59 }
 0x20b   :  { %v524_v26 = vpop.f32.mrf.mxu1 }
 0x20c   :  { %543 = vadd.xlane.f32.xlu1 %v542_v39  ;;  %v546_v8 = vadd.f32 %v545_v6, %v524_v26 }
 0x20d   :  { %v526_v37 = vpop.f32.mrf.mxu1 }
 0x20e   :  { %v547_v47 = vadd.f32 %v546_v8, %v526_v37 }
 0x20f   :  { %v1980_v60 = vpop.f32.mrf.mxu1 }
 0x210   :  { %v551_v43 = vadd.f32 %v550_v11, %v1980_v60 }
 0x211   :  { %v1983_v7 = vpop.f32.mrf.mxu1 }
 0x212   :  { %v552_v48 = vadd.f32 %v551_v43, %v1983_v7 }
 0x214   :  { %553 = vadd.xlane.f32.xlu0 %v552_v48 }
 0x218   :  { %548 = vadd.xlane.f32.xlu0 %v547_v47 }
 0x21c   :  { %538 = vadd.xlane.f32.xlu0 %v537_v54  ;;  %v1471_v54 = vmov 0  }
 0x21d   :  { %837 = vperm.xlu1 %1351, %v1629_v36  }
 0x221   :  { %842 = vrot.lane.b32.xlu1 %v1629_v36, %s1447_s23 }
 0x222   :  { %1352 = vset.pattern.permute.xlu1 %v1468_v14 }
 0x225   :  { %653 = vperm.xlu1 %1352, %v1848_v3  }
 0x229   :  { %1354 = vset.pattern.permute.xlu1 %v1469_v15 }
 0x232   :  { %832 = vperm.xlu0 %1350, %v1629_v36  }
 0x236   :  { %1353 = vset.pattern.permute.xlu0 %v1468_v14 }
 0x276   :  { %v819_v19 = vpop.xlane.xlu1 %818 }
 0x277   :  { %v821_v28 = vmul.f32 0.5, %v819_v19 }
 0x279   :  { %v822_v53 = vsub.f32 %v1968_v46, %v821_v28 }
 0x27b   :  { %v823_v39 = vmul.f32 %v822_v53, %v822_v53 }
 0x27d   :  { %v824_v46 = vsel %vm816_vm0, %v823_v39, 0.0 }
 0x295   :  { %v544_v5 = vpop.xlane.xlu1 %543 }
 0x296   :  { %v557_v61 = vmul.f32 0.001953125, %v544_v5 }
 0x298   :  { %v2005_v50 = vsub.f32 %v429_v18, %v557_v61  ;;  %v2007_v29 = vsub.f32 %v431_v38, %v557_v61 }
 0x29a   :  { %v581_v52 = vmul.f32 %v2007_v29, %v2007_v29 }
 0x29d   :  { %v554_v20 = vpop.xlane.xlu0 %553 }
 0x2a1   :  { %v549_v21 = vpop.xlane.xlu0 %548 }
 0x2a2   :  { %v558_v22 = vmul.f32 0.001953125, %v549_v21 }
 0x2a4   :  { %v1993_v63 = vsub.f32 %v435_v40, %v558_v22  ;;  %v1995_v13 = vsub.f32 %v437_v45, %v558_v22  ;;  %v1997_v25 = vsub.f32 %v524_v26, %v558_v22  ;;  %v1999_v31 = vsub.f32 %v526_v37, %v558_v22 }
 0x2a5   :  { %v539_v30 = vpop.xlane.xlu0 %538  ;;  %v2040_v26 = vsub.f32 %v1975_v59, %v557_v61 }
 0x2a6   :  { %v556_v44 = vmul.f32 0.001953125, %v539_v30  ;;  %v584_v51 = vmul.f32 %v1993_v63, %v1993_v63  ;;  %v585_v24 = vmul.f32 %v1995_v13, %v1995_v13  ;;  %v586_v32 = vmul.f32 %v1997_v25, %v1997_v25 }
 0x2a7   :  { %v587_v33 = vmul.f32 %v1999_v31, %v1999_v31  ;;  %v583_v6 = vmul.f32 %v2040_v26, %v2040_v26 }
 0x2a8   :  { %v2012_v23 = vsub.f32 %v1960_v0, %v556_v44  ;;  %v2015_v34 = vsub.f32 %v1962_v1, %v556_v44  ;;  %v602_v27 = vadd.f32 %v585_v24, %v584_v51  ;;  %v2017_v12 = vsub.f32 %v512_v17, %v556_v44 }
 0x2a9   :  { %v2021_v18 = vsub.f32 %v514_v56, %v556_v44  ;;  %v580_v1 = vmul.f32 %v2005_v50, %v2005_v50  ;;  %v2037_v56 = vsub.f32 %v1972_v58, %v557_v61  ;;  %v559_v58 = vmul.f32 0.001953125, %v554_v20 }
 0x2aa   :  { %v603_v35 = vadd.f32 %v602_v27, %v586_v32  ;;  %v576_v38 = vmul.f32 %v2012_v23, %v2012_v23  ;;  %v577_v0 = vmul.f32 %v2015_v34, %v2015_v34  ;;  %v578_v45 = vmul.f32 %v2017_v12, %v2017_v12 }
 0x2ab   :  { %v579_v55 = vmul.f32 %v2021_v18, %v2021_v18  ;;  %v597_v16 = vadd.f32 %v581_v52, %v580_v1  ;;  %v582_v37 = vmul.f32 %v2037_v56, %v2037_v56  ;;  %v2054_v59 = vsub.f32 %v1964_v41, %v559_v58 }
 0x2ac   :  { %v604_v40 = vadd.f32 %v603_v35, %v587_v33  ;;  %v592_v49 = vadd.f32 %v577_v0, %v576_v38  ;;  %v2057_v8 = vsub.f32 %v1966_v42, %v559_v58  ;;  %v2067_v10 = vsub.f32 %v1983_v7, %v559_v58 }
 0x2ad   :  { %v598_v11 = vadd.f32 %v597_v16, %v582_v37  ;;  %v833_v61 = vpop.permute.xlu0 %832 }
 0x2ae   :  { %605 = vadd.xlane.f32.xlu0 %v604_v40  ;;  %v593_v17 = vadd.f32 %v592_v49, %v578_v45  ;;  %v589_v48 = vmul.f32 %v2057_v8, %v2057_v8  ;;  %v591_v42 = vmul.f32 %v2067_v10, %v2067_v10 }
 0x2af   :  { %v599_v43 = vadd.f32 %v598_v11, %v583_v6 }
 0x2b0   :  { %v594_v57 = vadd.f32 %v593_v17, %v579_v55 }
 0x2b2   :  { %595 = vadd.xlane.f32.xlu1 %v594_v57 }
 0x2b6   :  { %825 = vadd.xlane.f32.xlu1 %v824_v46 }
 0x2ba   :  { %600 = vadd.xlane.f32.xlu1 %v599_v43 }
 0x2c4   :  { %649 = vperm.xlu0 %1353, %v1843_v2  }
 0x2cb   :  { %685 = vperm.xlu1 %1354, %v1848_v3   ;;  %v588_v3 = vmul.f32 %v2054_v59, %v2054_v59 }
 0x2cd   :  { %v607_v9 = vadd.f32 %v589_v48, %v588_v3 }
 0x2cf   :  { %1355 = vset.pattern.permute.xlu1 %v1468_v14 }
 0x2d0   :  { %645 = vperm.xlu1 %1355, %v1838_v62  }
 0x2d4   :  { %1356 = vset.pattern.permute.xlu1 %v1469_v15 }
 0x2d5   :  { %681 = vperm.xlu1 %1356, %v1843_v2   ;;  %v2064_v2 = vsub.f32 %v1980_v60, %v559_v58  ;;  %v838_v60 = vpop.permute.xlu1 %837 }
 0x2d9   :  { %1357 = vset.pattern.permute.xlu1 %v1468_v14  ;;  %v843_v14 = vpop.permute.xlu1 %842 }
 0x2da   :  { %641 = vperm.xlu1 %1357, %v1629_v36  }
 0x2dd   :  { %v2075_v7 = vpop.permute.xlu1 %653 }
 0x2de   :  { %1358 = vset.pattern.permute.xlu1 %v1469_v15 }
 0x2df   :  { %677 = vperm.xlu1 %1358, %v1838_v62   ;;  %v590_v62 = vmul.f32 %v2064_v2, %v2064_v2 }
 0x2e1   :  { %v608_v41 = vadd.f32 %v607_v9, %v590_v62 }
 0x2e3   :  { %v609_v47 = vadd.f32 %v608_v41, %v591_v42 }
 0x303   :  { %610 = vadd.xlane.f32.xlu1 %v609_v47 }
 0x314   :  { %673 = vperm.xlu1 %1358, %v1629_v36  }
 0x318   :  { %926 = vrot.lane.b32.xlu1 %v1629_v36, %s1470_s16 }
 0x319   :  { %1359 = vset.pattern.permute.xlu1 %v1471_v54 }
 0x337   :  { %v606_v28 = vpop.xlane.xlu0 %605 }
 0x338   :  { %v614_v33 = vmul.f32 0.001953125, %v606_v28 }
 0x33a   :  { %v618_v38 = vadd.f32 0.0003, %v614_v33 }
 0x33b   :  { %v596_v15 = vpop.xlane.xlu1 %595 }
 0x33c   :  { %v612_v1 = vmul.f32 0.001953125, %v596_v15 }
 0x33e   :  { %v616_v49 = vadd.f32 0.0003, %v612_v1 }
 0x33f   :  { %v826_v19 = vpop.xlane.xlu1 %825  ;;  %v650_v46 = vpop.permute.xlu0 %649 }
 0x340   :  { %v827_v20 = vmul.f32 0.5, %v826_v19 }
 0x342   :  { %v828_v5 = vadd.f32 0.0003, %v827_v20 }
 0x343   :  { %v601_v36 = vpop.xlane.xlu1 %600 }
 0x344   :  { %1365 = vrsqrt.f32 %v828_v5  ;;  %v613_v0 = vmul.f32 0.001953125, %v601_v36 }
 0x345   :  { %1367 = vrsqrt.f32 %v618_v38 }
 0x346   :  { %v617_v40 = vadd.f32 0.0003, %v613_v0 }
 0x347   :  { %v686_v24 = vpop.permute.xlu1 %685 }
 0x348   :  { %1369 = vrsqrt.f32 %v617_v40 }
 0x349   :  { %1371 = vrsqrt.f32 %v616_v49 }
 0x34b   :  { %v646_v32 = vpop.permute.xlu1 %645 }
 0x350   :  { %v682_v27 = vpop.permute.xlu1 %681 }
 0x351   :  { %v1366_v21 = vpop.eup %1365 }
 0x352   :  { %v830_v22 = vmul.f32 %v1366_v21, %v822_v53  ;;  %v1368_v17 = vpop.eup %1367 }
 0x353   :  { %v632_v57 = vmul.f32 %v1368_v17, %v1993_v63  ;;  %v633_v16 = vmul.f32 %v1368_v17, %v1995_v13  ;;  %v634_v37 = vmul.f32 %v1368_v17, %v1997_v25  ;;  %v635_v11 = vmul.f32 %v1368_v17, %v1999_v31 }
 0x354   :  { %v835_v30 = vmul.f32 %v833_v61, %v830_v22 }
 0x355   :  { %v2079_v35 = vpop.permute.xlu1 %641  ;;  %v1370_v39 = vpop.eup %1369  ;;  %v664_v43 = vmul.f32 %v650_v46, %v632_v57  ;;  %v665_v58 = vmul.f32 %v650_v46, %v633_v16  ;;  %v666_v9 = vmul.f32 %v650_v46, %v634_v37  ;;  %v667_v62 = vmul.f32 %v650_v46, %v635_v11 }
 0x356   :  { %v840_v44 = vadd.f32 %v838_v60, %v835_v30  ;;  %v1372_v6 = vpop.eup %1371  ;;  %v629_v3 = vmul.f32 %v1370_v39, %v2007_v29  ;;  %v631_v48 = vmul.f32 %v1370_v39, %v2040_v26  ;;  %v628_v42 = vmul.f32 %v1370_v39, %v2005_v50 }
 0x357   :  { %v624_v41 = vmul.f32 %v1372_v6, %v2012_v23  ;;  %v625_v63 = vmul.f32 %v1372_v6, %v2015_v34  ;;  %v630_v25 = vmul.f32 %v1370_v39, %v2037_v56  ;;  %v626_v31 = vmul.f32 %v1372_v6, %v2017_v12 }
 0x358   :  { %v841_v51 = vmax.f32 %v840_v44, 0.0  ;;  %v627_v47 = vmul.f32 %v1372_v6, %v2021_v18  ;;  %v661_v23 = vmul.f32 %v646_v32, %v629_v3  ;;  %v696_v34 = vadd.f32 %v682_v27, %v664_v43 }
 0x359   :  { %v698_v15 = vadd.f32 %v682_v27, %v666_v9  ;;  %v660_v19 = vmul.f32 %v646_v32, %v628_v42  ;;  %v697_v20 = vadd.f32 %v682_v27, %v665_v58  ;;  %v657_v22 = vmul.f32 %v2079_v35, %v625_v63 }
 0x35a   :  { %1312 = vmatpush3.msra.mxu1 %v841_v51  ;;  %v678_v45 = vpop.permute.xlu1 %677  ;;  %v659_v61 = vmul.f32 %v2079_v35, %v627_v47  ;;  %v1472_v3 = vmov 1  }
 0x35b   :  { %1314 = vmatmul.mubr.msk.f32.vlgmr.msra.gmra.mxu1 %vm844_vm4, %v843_v14  ;;  %v663_v14 = vmul.f32 %v646_v32, %v631_v48  ;;  %v693_v44 = vadd.f32 %v678_v45, %v661_v23  ;;  %v1377_v23 = vld [vmem:[#allocation6] sm:$0xff] }
 0x35c   :  { %1066 = vmatprep.mubr.f32.mxu1 %v1462_v4 }
 0x35d   :  { %v695_v51 = vadd.f32 %v678_v45, %v663_v14  ;;  %v709_v57 = vmax.f32 %v693_v44, 0.0 }
 0x35f   :  { %v711_v16 = vmax.f32 %v695_v51, 0.0 }
 0x38c   :  { %v611_v52 = vpop.xlane.xlu1 %610 }
 0x38d   :  { %v615_v53 = vmul.f32 0.001953125, %v611_v52  ;;  %v712_v52 = vmax.f32 %v696_v34, 0.0 }
 0x38f   :  { %v619_v55 = vadd.f32 0.0003, %v615_v53  ;;  %v714_v53 = vmax.f32 %v698_v15, 0.0 }
 0x390   :  { %v674_v30 = vpop.permute.xlu1 %673 }
 0x391   :  { %1373 = vrsqrt.f32 %v619_v55  ;;  %v689_v40 = vadd.f32 %v674_v30, %v657_v22  ;;  %v691_v49 = vadd.f32 %v674_v30, %v659_v61 }
 0x393   :  { %v707_v37 = vmax.f32 %v691_v49, 0.0 }
 0x394   :  { %v927_v6 = vpop.permute.xlu1 %926 }
 0x39e   :  { %v1374_v13 = vpop.eup %1373 }
 0x39f   :  { %v637_v60 = vmul.f32 %v1374_v13, %v2057_v8  ;;  %v639_v29 = vmul.f32 %v1374_v13, %v2067_v10  ;;  %v636_v26 = vmul.f32 %v1374_v13, %v2054_v59  ;;  %v638_v54 = vmul.f32 %v1374_v13, %v2064_v2 }
 0x3a0   :  { %v662_v8 = vmul.f32 %v646_v32, %v630_v25  ;;  %v699_v10 = vadd.f32 %v682_v27, %v667_v62  ;;  %v658_v32 = vmul.f32 %v2079_v35, %v626_v31  ;;  %v692_v27 = vadd.f32 %v678_v45, %v660_v19 }
 0x3a1   :  { %v669_v50 = vmul.f32 %v2075_v7, %v637_v60  ;;  %v671_v56 = vmul.f32 %v2075_v7, %v639_v29  ;;  %v668_v12 = vmul.f32 %v2075_v7, %v636_v26  ;;  %v670_v18 = vmul.f32 %v2075_v7, %v638_v54 }
 0x3a2   :  { %v656_v7 = vmul.f32 %v2079_v35, %v624_v41  ;;  %v694_v0 = vadd.f32 %v678_v45, %v662_v8  ;;  %v715_v1 = vmax.f32 %v699_v10, 0.0  ;;  %v690_v17 = vadd.f32 %v674_v30, %v658_v32 }
 0x3a3   :  { %v701_v5 = vadd.f32 %v686_v24, %v669_v50  ;;  %v703_v59 = vadd.f32 %v686_v24, %v671_v56  ;;  %v700_v21 = vadd.f32 %v686_v24, %v668_v12  ;;  %v702_v2 = vadd.f32 %v686_v24, %v670_v18 }
 0x3a4   :  { %v713_v24 = vmax.f32 %v697_v20, 0.0  ;;  %v688_v55 = vadd.f32 %v674_v30, %v656_v7  ;;  %v708_v39 = vmax.f32 %v692_v27, 0.0  ;;  %v710_v35 = vmax.f32 %v694_v0, 0.0 }
 0x3a5   :  { %v717_v36 = vmax.f32 %v701_v5, 0.0  ;;  %v719_v28 = vmax.f32 %v703_v59, 0.0  ;;  %v716_v33 = vmax.f32 %v700_v21, 0.0  ;;  %v718_v38 = vmax.f32 %v702_v2, 0.0  ;;  %v1119_v21 = vld [vmem:[#allocation6 + $0x20] sm:$0x7] }
 0x3a6   :  { %v705_v45 = vmax.f32 %v689_v40, 0.0  ;;  %v704_v11 = vmax.f32 %v688_v55, 0.0  ;;  %v706_v46 = vmax.f32 %v690_v17, 0.0  ;;  %v1474_v54 = vmov 121  }
 0x3a7   :  { %955 = vmatprep.subr.mxu0 %v717_v36  ;;  %1026 = vmatprep.subr.mxu1 %v719_v28  ;;  %v1475_v2 = vmov 8  }
 0x3a8   :  { %956 = vmatpush1.msra.mxu0 %v716_v33  ;;  %1027 = vmatpush1.msra.mxu1 %v718_v38 }
 0x3a9   :  { %957 = vmatprep.subr.mxu0 %v713_v24  ;;  %1028 = vmatprep.subr.mxu1 %v715_v1 }
 0x3aa   :  { %958 = vmatpush1.msra.mxu0 %v712_v52  ;;  %1029 = vmatpush1.msra.mxu1 %v714_v53 }
 0x3ab   :  { %959 = vmatprep.subr.mxu0 %v709_v57  ;;  %1030 = vmatprep.subr.mxu1 %v711_v16 }
 0x3ac   :  { %960 = vmatpush1.msra.mxu0 %v708_v39  ;;  %1031 = vmatpush1.msra.mxu1 %v710_v35 }
 0x3ad   :  { %961 = vmatprep.subr.mxu0 %v705_v45  ;;  %1032 = vmatprep.subr.mxu1 %v707_v37 }
 0x3ae   :  { %962 = vmatpush1.msra.mxu0 %v704_v11  ;;  %1033 = vmatpush1.msra.mxu1 %v706_v46 }
 0x3af   :  { %1297 = vmatmul.mubr.msk.f32.vlgmr.msra.gmra.mxu0 %vm928_vm5, %v927_v6  ;;  %1298 = vmatmul.mubr.msk.f32.vlgmr.msra.gmra.mxu1 %vm928_vm5, %v927_v6 }
 0x3b0   :  { %1191 = vmatprep.mubr.f32.mxu0 %v1462_v4  ;;  %1262 = vmatprep.mubr.f32.mxu1 %v1462_v4  ;;  %v1473_v4 = vmov 120  }
 0x3b1   :  { %1361 = vset.pattern.permute.xlu0 %v1473_v4 }
 0x41b   :  { %v913_v43 = vpop.f32.mrf.mxu1 }
 0x41c   :  { %919 = vperm.xlu1 %1359, %v913_v43  }
 0x41d   :  { %v1315_v58 = vpop.f32.mrf.mxu1 }
 0x420   :  { %1360 = vset.pattern.permute.xlu1 %v1472_v3 }
 0x421   :  { %923 = vperm.xlu1 %1360, %v913_v43  }
 0x425   :  { %1362 = vset.pattern.permute.xlu1 %v1474_v54 }
 0x46f   :  { %v997_v48 = vpop.f32.mrf.mxu0  ;;  %v1068_v13 = vpop.f32.mrf.mxu1 }
 0x471   :  { %v999_v9 = vpop.f32.mrf.mxu0  ;;  %v1070_v47 = vpop.f32.mrf.mxu1 }
 0x497   :  { %v920_v62 = vpop.permute.xlu1 %919 }
 0x498   :  { %v998_v41 = vadd.f32 %v997_v48, %v920_v62  ;;  %v1000_v63 = vadd.f32 %v999_v9, %v920_v62 }
 0x49a   :  { %v1073_v25 = vadd.f32 %v1000_v63, %v998_v41 }
 0x49c   :  { %v924_v42 = vpop.permute.xlu1 %923 }
 0x49d   :  { %v1069_v31 = vadd.f32 %v1068_v13, %v924_v42  ;;  %v1071_v60 = vadd.f32 %v1070_v47, %v924_v42 }
 0x49f   :  { %v1074_v29 = vadd.f32 %v1073_v25, %v1069_v31 }
 0x4a1   :  { %v1075_v26 = vadd.f32 %v1074_v29, %v1071_v60 }
 0x4a3   :  { %1076 = vadd.xlane.f32.xlu0 %v1075_v26 }
 0x4b9   :  { %1100 = vperm.xlu0 %1361, %v1377_v23  }
 0x4bd   :  { %1364 = vset.pattern.permute.xlu0 %v1475_v2 }
 0x52c   :  { %v1077_v14 = vpop.xlane.xlu0 %1076 }
 0x52d   :  { %v1078_v34 = vmul.f32 0.001953125, %v1077_v14 }
 0x52f   :  { %v1079_v15 = vsub.f32 %v998_v41, %v1078_v34  ;;  %v1080_v50 = vsub.f32 %v1000_v63, %v1078_v34  ;;  %v1081_v56 = vsub.f32 %v1069_v31, %v1078_v34  ;;  %v1082_v12 = vsub.f32 %v1071_v60, %v1078_v34 }
 0x531   :  { %v1083_v18 = vmul.f32 %v1079_v15, %v1079_v15  ;;  %v1084_v19 = vmul.f32 %v1080_v50, %v1080_v50  ;;  %v1085_v8 = vmul.f32 %v1081_v56, %v1081_v56  ;;  %v1086_v10 = vmul.f32 %v1082_v12, %v1082_v12 }
 0x533   :  { %v1087_v20 = vadd.f32 %v1084_v19, %v1083_v18 }
 0x534   :  { %v1101_v51 = vpop.permute.xlu0 %1100 }
 0x535   :  { %v1088_v5 = vadd.f32 %v1087_v20, %v1085_v8 }
 0x537   :  { %v1089_v59 = vadd.f32 %v1088_v5, %v1086_v10 }
 0x539   :  { %1090 = vadd.xlane.f32.xlu1 %v1089_v59 }
 0x54a   :  { %1108 = vperm.xlu1 %1362, %v1377_v23  }
 0x54e   :  { %1363 = vset.pattern.permute.xlu1 %v1475_v2 }
 0x54f   :  { %1122 = vperm.xlu1 %1363, %v1119_v21  }
 0x5c2   :  { %v1091_v22 = vpop.xlane.xlu1 %1090 }
 0x5c3   :  { %v1092_v61 = vmul.f32 0.001953125, %v1091_v22 }
 0x5c5   :  { %v1093_v30 = vadd.f32 0.0003, %v1092_v61 }
 0x5c6   :  { %v1109_v7 = vpop.permute.xlu1 %1108 }
 0x5c7   :  { %1375 = vrsqrt.f32 %v1093_v30 }
 0x5ca   :  { %v1123_v16 = vpop.permute.xlu1 %1122 }
 0x5d4   :  { %v1376_v44 = vpop.eup %1375 }
 0x5d5   :  { %v1095_v36 = vmul.f32 %v1376_v44, %v1079_v15  ;;  %v1096_v28 = vmul.f32 %v1376_v44, %v1080_v50  ;;  %v1097_v33 = vmul.f32 %v1376_v44, %v1081_v56  ;;  %v1098_v38 = vmul.f32 %v1376_v44, %v1082_v12 }
 0x5d7   :  { %v1103_v32 = vmul.f32 %v1101_v51, %v1095_v36  ;;  %v1104_v27 = vmul.f32 %v1101_v51, %v1096_v28  ;;  %v1105_v0 = vmul.f32 %v1101_v51, %v1097_v33  ;;  %v1106_v24 = vmul.f32 %v1101_v51, %v1098_v38 }
 0x5d9   :  { %v1111_v1 = vadd.f32 %v1109_v7, %v1103_v32  ;;  %v1113_v40 = vadd.f32 %v1109_v7, %v1105_v0  ;;  %v1112_v49 = vadd.f32 %v1109_v7, %v1104_v27  ;;  %v1114_v52 = vadd.f32 %v1109_v7, %v1106_v24 }
 0x5db   :  { %v1115_v53 = vmax.f32 %v1111_v1, 0.0  ;;  %v1117_v55 = vmax.f32 %v1113_v40, 0.0  ;;  %v1116_v17 = vmax.f32 %v1112_v49, 0.0  ;;  %v1118_v57 = vmax.f32 %v1114_v52, 0.0 }
 0x5dd   :  { %1157 = vmatprep.subr.mxu0 %v1116_v17  ;;  %1228 = vmatprep.subr.mxu1 %v1118_v57 }
 0x5de   :  { %1158 = vmatpush1.msra.mxu0 %v1115_v53  ;;  %1229 = vmatpush1.msra.mxu1 %v1117_v55 }
 0x5df   :  { %1299 = vmatmul.mubr.msk.f32.vlgmr.msra.gmra.mxu0 %vm844_vm4, %v1119_v21  ;;  %1300 = vmatmul.mubr.msk.f32.vlgmr.msra.gmra.mxu1 %vm844_vm4, %v1119_v21 }
 0x69f   :  { %v1193_v39 = vpop.f32.mrf.mxu0  ;;  %v1264_v35 = vpop.f32.mrf.mxu1 }
 0x6a0   :  { %v1194_v11 = vadd.f32 %v1193_v39, %v1123_v16  ;;  %v1265_v46 = vadd.f32 %v1264_v35, %v1123_v16 }
 0x6a1   :  { %v1195_v45 = vpop.f32.mrf.mxu0  ;;  %v1266_v37 = vpop.f32.mrf.mxu1 }
 0x6a2   :  { %v1196_v6 = vadd.f32 %v1195_v45, %v1123_v16  ;;  %v1267_v43 = vadd.f32 %v1266_v37, %v1123_v16 }
 0x6a4   :  { %v1271_v58 = vcombine.low %v1194_v11, %v1196_v6  ;;  %v1276_v3 = vcombine.low %v1265_v46, %v1267_v43 }
 0x6a6   :  { %1273 = vst [vmem:[%s2118_s3] sm:$0x77] %v1271_v58  ;;  %1301 = vst [vmem:[%s2118_s3 + $0x8] sm:$0x77] %v1276_v3 }
 0x6a7   :  { %1284 = vsyncpa [#allocation3], 1 }
 0x6a8   :  { %1285 = vsyncpa [#allocation5], 1 }

</bundles_post_ra>
